<compile_context>
chip_gen: v6e
topology: v6e:2x2x1
jax: 0.10.0
libtpu: 0.0.40
codegen_flags: <defaults>
</compile_context>

<pallas_src>
import jax
import jax.numpy as jnp
from jax.experimental import pallas as pl
from jax.experimental.pallas import tpu as pltpu


def _round_up(x, m):
    return (x + m - 1) // m * m


def _largest_divisor_leq(n, cap):
    for d in range(min(n, cap), 0, -1):
        if n % d == 0:
            return d
    return 1


def _pad_to(a, shape):
    return jnp.pad(a, [(0, s - d) for d, s in zip(a.shape, shape)])


def _pad_gates(w, h, hp):
    """Pad the trailing (3*h) gate axis per-gate to 3*hp so r|z|n stay lane-aligned."""
    lead = w.shape[:-1]
    w3 = w.reshape(lead + (3, h))
    w3 = jnp.pad(w3, [(0, 0)] * len(lead) + [(0, 0), (0, hp - h)])
    return w3.reshape(lead + (3 * hp,))


def _make_kernel(Tc, TB, Hp):
    def kernel(emb_ref, wih_ref, whh_ref, bgi_ref, bhn_ref, wc_ref, bc_ref,
               out_ref, gi_ref, h_ref):
        tc = pl.program_id(1)

        # Hidden state persists across time chunks in VMEM; reset it at the first
        # chunk of every batch tile.
        @pl.when(tc == 0)
        def _():
            h_ref[...] = jnp.zeros_like(h_ref)

        # (1) Input projection for this time chunk, one MXU-friendly matmul
        #     (Tc*TB, E) @ (E, 3*Hp) with f32 accumulation, off the serial path.
        #     bgi already contains b_ih + [b_hr, b_hz, 0] (loop-invariant fold).
        gi_ref[...] = (
            jnp.dot(emb_ref[...], wih_ref[...],
                    preferred_element_type=jnp.float32)
            + bgi_ref[...])

        mat_dtype = whh_ref.dtype
        b_hn = bhn_ref[...]                       # (1, Hp)

        # (2) Serial GRU recurrence over the chunk; h is a vreg-resident f32 carry.
        # TODO(synk): keep W_hh staged in the MXU across steps via
        # pltpu.matmul_push_rhs / matmul_acc_lhs / matmul_pop.
        def step(t, h):
            row = pl.multiple_of(t * TB, 8)                  # sublane-aligned offset
            gi = gi_ref[pl.ds(row, TB), :]                   # (TB, 3*Hp)
            hm = h.astype(mat_dtype)
            # Gate-split recurrent matmuls: r/z sigmoids (EUP) overlap the n-gate MXU.
            gh_rz = jnp.dot(hm, whh_ref[:, :2 * Hp],
                            preferred_element_type=jnp.float32)
            gh_n = jnp.dot(hm, whh_ref[:, 2 * Hp:],
                           preferred_element_type=jnp.float32)
            r = jax.nn.sigmoid(gi[:, :Hp] + gh_rz[:, :Hp])
            z = jax.nn.sigmoid(gi[:, Hp:2 * Hp] + gh_rz[:, Hp:])
            n = jnp.tanh(gi[:, 2 * Hp:] + r * (gh_n + b_hn))
            return (1.0 - z) * n + z * h

        h_last = jax.lax.fori_loop(0, Tc, step, h_ref[...], unroll=min(Tc, 8))
        h_ref[...] = h_last

        # (3) Classifier on the final hidden state; lane-dense (TB, Cp) store.
        @pl.when(tc == pl.num_programs(1) - 1)
        def _():
            out_ref[...] = (
                jnp.dot(h_last.astype(mat_dtype), wc_ref[...],
                        preferred_element_type=jnp.float32)
                + bc_ref[...]).astype(out_ref.dtype)

    return kernel


def rnn_position_model(x_ids, params, *, matmul_dtype=jnp.bfloat16,
                       time_chunk_target=64, batch_tile_target=64):
    """Forward pass equivalent to RNNPositionModel.forward (batch_first GRU)."""
    emb_table = params["embedding"]                 # (V, E), row 0 zeroed (padding_idx=0)
    # TODO(synk): at scale, move this gather in-kernel (scalar-prefetched ids +
    # per-chunk DMA gather) to avoid the (B, T, E) HBM round-trip.
    emb = jnp.take(emb_table, x_ids, axis=0)        # (B, T, E)
    B, T, E = emb.shape
    H = params["w_hh"].shape[0]
    C = params["w_c"].shape[1]

    # TPU-friendly padded sizes.
    Hp = _round_up(H, 128)          # lane multiple -> lane-aligned per-gate slices
    Cp = _round_up(C, 128)          # lane-dense output stores
    Bp16 = _round_up(B, 16)         # 16 rows per bf16 sublane group
    if Bp16 <= batch_tile_target:
        TB, Bp = Bp16, Bp16
    else:
        TB = _round_up(batch_tile_target, 16)
        Bp = _round_up(B, TB)
    nB = Bp // TB
    Tc = _largest_divisor_leq(T, time_chunk_target)   # time chunk bounds VMEM residency
    nT = T // Tc

    # Activations: batch-tile major, then time-major flattened rows inside a tile:
    # emb_in[b, t*TB + i, :] = embedding of (batch row b*TB + i, timestep t).
    emb_p = _pad_to(emb, (Bp, T, E))
    emb_in = (jnp.transpose(emb_p, (1, 0, 2))
              .reshape(T, nB, TB, E)
              .transpose(1, 0, 2, 3)
              .reshape(nB, T * TB, E)
              .astype(matmul_dtype))

    # Weights pre-transposed to (in_dim, out_dim); gate axis padded per-gate (r|z|n).
    w_ih = _pad_gates(params["w_ih"], H, Hp).astype(matmul_dtype)                        # (E, 3*Hp)
    w_hh = _pad_gates(_pad_to(params["w_hh"], (Hp, 3 * H)), H, Hp).astype(matmul_dtype)  # (Hp, 3*Hp)
    # Fold the loop-invariant r/z hidden biases into the projection bias; keep only
    # b_hn on the per-step path (it sits inside r * (W_hn h + b_hn)).
    b_ih3 = params["b_ih"].reshape(1, 3, H)
    b_hh3 = params["b_hh"].reshape(1, 3, H)
    b_gi3 = b_ih3.at[:, 0:2, :].add(b_hh3[:, 0:2, :])
    b_gi = jnp.pad(b_gi3, ((0, 0), (0, 0), (0, Hp - H))).reshape(1, 3 * Hp).astype(jnp.float32)
    b_hn = jnp.pad(b_hh3[:, 2, :], ((0, 0), (0, Hp - H))).astype(jnp.float32)            # (1, Hp)
    w_c = _pad_to(params["w_c"], (Hp, Cp)).astype(matmul_dtype)                          # (Hp, Cp)
    b_c = _pad_to(params["b_c"], (1, Cp)).astype(jnp.float32)                            # (1, Cp)

    # VMEM budget sized from the actual buffers (double-buffered blocks + scratch).
    mat_bytes = jnp.dtype(matmul_dtype).itemsize
    weight_bytes = (E * 3 * Hp + Hp * 3 * Hp + Hp * Cp) * mat_bytes + (4 * Hp + Cp) * 4
    block_bytes = Tc * TB * E * mat_bytes + TB * Cp * 4
    scratch_bytes = (Tc * TB * 3 * Hp + TB * Hp) * 4
    vmem_limit = 2 * (weight_bytes + block_bytes) + scratch_bytes + (2 << 20)
    vmem_limit = int(min(max(vmem_limit, 8 << 20), 56 << 20))   # stay under v7x 64 MiB

    out_p = pl.pallas_call(
        _make_kernel(Tc, TB, Hp),
        out_shape=jax.ShapeDtypeStruct((Bp, Cp), jnp.float32),
        grid_spec=pltpu.PrefetchScalarGridSpec(
            num_scalar_prefetch=0,
            grid=(nB, nT),                                   # batch parallel, time serial
            in_specs=[
                pl.BlockSpec((pl.Squeezed(), Tc * TB, E), lambda b, t: (b, t, 0)),
                pl.BlockSpec((E, 3 * Hp), lambda b, t: (0, 0)),
                pl.BlockSpec((Hp, 3 * Hp), lambda b, t: (0, 0)),
                pl.BlockSpec((1, 3 * Hp), lambda b, t: (0, 0)),
                pl.BlockSpec((1, Hp), lambda b, t: (0, 0)),
                pl.BlockSpec((Hp, Cp), lambda b, t: (0, 0)),
                pl.BlockSpec((1, Cp), lambda b, t: (0, 0)),
            ],
            out_specs=pl.BlockSpec((TB, Cp), lambda b, t: (b, 0)),
            scratch_shapes=[
                pltpu.VMEM((Tc * TB, 3 * Hp), jnp.float32),   # per-chunk input projection
                pltpu.VMEM((TB, Hp), jnp.float32),            # hidden state across chunks
            ]),
        compiler_params=pltpu.CompilerParams(
            dimension_semantics=("parallel", "arbitrary"),
            vmem_limit_bytes=vmem_limit),
    )(emb_in, w_ih, w_hh, b_gi, b_hn, w_c, b_c)

    return out_p[:B, :C]


def init_params(key, vocab_size, embed_dim, hidden_dim, num_classes):
    ks = jax.random.split(key, 7)
    scale = 0.1
    embedding = scale * jax.random.normal(ks[0], (vocab_size, embed_dim), jnp.float32)
    embedding = embedding.at[0].set(0.0)            # padding_idx=0
    # GRU parameters, stored pre-transposed: x @ W_ih, h @ W_hh ; gate order r|z|n.
    w_ih = scale * jax.random.normal(ks[1], (embed_dim, 3 * hidden_dim), jnp.float32)
    w_hh = scale * jax.random.normal(ks[2], (hidden_dim, 3 * hidden_dim), jnp.float32)
    b_ih = scale * jax.random.normal(ks[3], (1, 3 * hidden_dim), jnp.float32)
    b_hh = scale * jax.random.normal(ks[4], (1, 3 * hidden_dim), jnp.float32)
    w_c = scale * jax.random.normal(ks[5], (hidden_dim, num_classes), jnp.float32)
    b_c = scale * jax.random.normal(ks[6], (1, num_classes), jnp.float32)
    return dict(embedding=embedding, w_ih=w_ih, w_hh=w_hh,
                b_ih=b_ih, b_hh=b_hh, w_c=w_c, b_c=b_c)


def reference_forward(x_ids, params, *, matmul_dtype=jnp.float32):
    """Pure-JAX reference (same math; optional matched matmul dtype)."""
    emb = jnp.take(params["embedding"], x_ids, axis=0)
    B, T, E = emb.shape
    H = params["w_hh"].shape[0]
    w_ih = params["w_ih"].astype(matmul_dtype)
    w_hh = params["w_hh"].astype(matmul_dtype)
    w_c = params["w_c"].astype(matmul_dtype)
    h = jnp.zeros((B, H), jnp.float32)
    for t in range(T):
        x = emb[:, t, :].astype(matmul_dtype)
        gi = jnp.dot(x, w_ih, preferred_element_type=jnp.float32) + params["b_ih"]
        gh = jnp.dot(h.astype(matmul_dtype), w_hh,
                     preferred_element_type=jnp.float32) + params["b_hh"]
        i_r, i_z, i_n = gi[:, :H], gi[:, H:2 * H], gi[:, 2 * H:]
        h_r, h_z, h_n = gh[:, :H], gh[:, H:2 * H], gh[:, 2 * H:]
        r = jax.nn.sigmoid(i_r + h_r)
        z = jax.nn.sigmoid(i_z + h_z)
        n = jnp.tanh(i_n + r * h_n)
        h = (1.0 - z) * n + z * h
    return jnp.dot(h.astype(matmul_dtype), w_c,
                   preferred_element_type=jnp.float32) + params["b_c"]


if __name__ == "__main__":
    vocab_size, embed_dim, hidden_dim, num_classes = 16, 32, 32, 4
    B, T = 2, 8

    key = jax.random.PRNGKey(0)
    pkey, xkey = jax.random.split(key)
    params = init_params(pkey, vocab_size, embed_dim, hidden_dim, num_classes)
    x_ids = jax.random.randint(xkey, (B, T), 0, vocab_size, dtype=jnp.int32)

    forward = jax.jit(rnn_position_model,
                      static_argnames=("matmul_dtype", "time_chunk_target",
                                       "batch_tile_target"))

    logits = jax.block_until_ready(forward(x_ids, params))
    assert logits.shape == (B, num_classes)

    # Matched-precision reference (bf16 matmul operands, f32 accumulation/gates).
    ref_bf16 = reference_forward(x_ids, params, matmul_dtype=jnp.bfloat16)
    assert jnp.allclose(logits, ref_bf16, atol=1e-3, rtol=1e-3), "mismatch vs bf16 reference"

    # Full-f32 reference (exact PyTorch semantics); bf16 matmuls perturb logits slightly.
    ref_f32 = reference_forward(x_ids, params, matmul_dtype=jnp.float32)
    assert jnp.allclose(logits, ref_f32, atol=3e-2, rtol=3e-2), "mismatch vs f32 reference"

    # Exercise the time-chunked grid (nT > 1) with the persistent hidden-state scratch.
    logits_chunked = jax.block_until_ready(forward(x_ids, params, time_chunk_target=2))
    assert jnp.allclose(logits_chunked, ref_bf16, atol=1e-3, rtol=1e-3), "chunked mismatch"

    # Exercise the batch-tiled parallel axis (nB > 1) plus multiple time chunks.
    B2 = 20
    x_ids2 = jax.random.randint(jax.random.PRNGKey(1), (B2, T), 0, vocab_size,
                                dtype=jnp.int32)
    logits2 = jax.block_until_ready(
        forward(x_ids2, params, time_chunk_target=4, batch_tile_target=16))
    ref2 = reference_forward(x_ids2, params, matmul_dtype=jnp.bfloat16)
    assert jnp.allclose(logits2, ref2, atol=1e-3, rtol=1e-3), "batch-tiled mismatch"

    print("KERNEL_OK")
</pallas_src>

<mosaic_0001>
module attributes {stable_mosaic.version = 11 : i64} {
  func.func @kernel(%arg0: i32, %arg1: i32, %arg2: memref<1x128x32xbf16, #tpu.memory_space<vmem>>, %arg3: memref<32x384xbf16, #tpu.memory_space<vmem>>, %arg4: memref<128x384xbf16, #tpu.memory_space<vmem>>, %arg5: memref<1x384xf32, #tpu.memory_space<vmem>>, %arg6: memref<1x128xf32, #tpu.memory_space<vmem>>, %arg7: memref<128x128xbf16, #tpu.memory_space<vmem>>, %arg8: memref<1x128xf32, #tpu.memory_space<vmem>>, %arg9: memref<16x128xf32, #tpu.memory_space<vmem>>, %arg10: memref<128x384xf32, #tpu.memory_space<vmem>>, %arg11: memref<16x128xf32, #tpu.memory_space<vmem>>) attributes {dimension_semantics = [#tpu.dimension_semantics<parallel>, #tpu.dimension_semantics<arbitrary>], iteration_bounds = array<i64: 1, 1>, scalar_prefetch = 0 : i64, scratch_operands = 2 : i64, tpu.core_type = #tpu.core_type<tc>, window_params = [{transform_indices = @transform_0, window_bounds = array<i64: 1, 128, 32>}, {pipeline_mode = #tpu.pipeline_mode<synchronous>, transform_indices = @transform_1, window_bounds = array<i64: 32, 384>}, {pipeline_mode = #tpu.pipeline_mode<synchronous>, transform_indices = @transform_2, window_bounds = array<i64: 128, 384>}, {pipeline_mode = #tpu.pipeline_mode<synchronous>, transform_indices = @transform_3, window_bounds = array<i64: 1, 384>}, {pipeline_mode = #tpu.pipeline_mode<synchronous>, transform_indices = @transform_4, window_bounds = array<i64: 1, 128>}, {pipeline_mode = #tpu.pipeline_mode<synchronous>, transform_indices = @transform_5, window_bounds = array<i64: 128, 128>}, {pipeline_mode = #tpu.pipeline_mode<synchronous>, transform_indices = @transform_6, window_bounds = array<i64: 1, 128>}, {transform_indices = @transform_7, window_bounds = array<i64: 16, 128>}]} {
    %c0_i32 = arith.constant 0 : i32
    %0 = arith.cmpi eq, %arg1, %c0_i32 : i32
    %1 = arith.extui %0 : i1 to i32
    %c0_i32_0 = arith.constant 0 : i32
    %2 = arith.cmpi ne, %1, %c0_i32_0 : i32
    scf.if %2 {
      %cst_104 = arith.constant 0.000000e+00 : f32
      %305 = vector.broadcast %cst_104 : f32 to vector<16x128xf32>
      %c0_105 = arith.constant 0 : index
      %c0_106 = arith.constant 0 : index
      %306 = vector.load %arg11[%c0_105, %c0_106] : memref<16x128xf32, #tpu.memory_space<vmem>>, vector<16x128xf32>
      tpu.vector_store %arg11[%c0_105, %c0_106], %305 {strides = array<i32>} : memref<16x128xf32, #tpu.memory_space<vmem>>, vector<16x128xf32>,
    } else {
    }
    %c0 = arith.constant 0 : index
    %c0_1 = arith.constant 0 : index
    %c0_2 = arith.constant 0 : index
    %3 = vector.load %arg2[%c0, %c0_1, %c0_2] : memref<1x128x32xbf16, #tpu.memory_space<vmem>>, vector<1x128x32xbf16>
    %4 = vector.shape_cast %3 : vector<1x128x32xbf16> to vector<128x32xbf16>
    %c0_3 = arith.constant 0 : index
    %c0_4 = arith.constant 0 : index
    %5 = vector.load %arg3[%c0_3, %c0_4] : memref<32x384xbf16, #tpu.memory_space<vmem>>, vector<32x384xbf16>
    %cst = arith.constant dense<0.000000e+00> : vector<128x384xf32>
    %6 = tpu.matmul %4, %5, %cst {dimension_numbers = #tpu.dot_dimension_numbers<[1], [0], [0], [1], [0, 0, 1, 1], [], []>} : vector<128x32xbf16>, vector<32x384xbf16>, vector<128x384xf32> -> vector<128x384xf32>
    %c0_5 = arith.constant 0 : index
    %c0_6 = arith.constant 0 : index
    %7 = vector.load %arg5[%c0_5, %c0_6] : memref<1x384xf32, #tpu.memory_space<vmem>>, vector<1x384xf32>
    %8 = vector.broadcast %7 : vector<1x384xf32> to vector<128x384xf32>
    %9 = arith.addf %6, %8 : vector<128x384xf32>
    %c0_7 = arith.constant 0 : index
    %c0_8 = arith.constant 0 : index
    %10 = vector.load %arg10[%c0_7, %c0_8] : memref<128x384xf32, #tpu.memory_space<vmem>>, vector<128x384xf32>
    tpu.vector_store %arg10[%c0_7, %c0_8], %9 {strides = array<i32>} : memref<128x384xf32, #tpu.memory_space<vmem>>, vector<128x384xf32>,
    %c0_9 = arith.constant 0 : index
    %c0_10 = arith.constant 0 : index
    %11 = vector.load %arg6[%c0_9, %c0_10] : memref<1x128xf32, #tpu.memory_space<vmem>>, vector<1x128xf32>
    %c0_11 = arith.constant 0 : index
    %c0_12 = arith.constant 0 : index
    %12 = vector.load %arg11[%c0_11, %c0_12] : memref<16x128xf32, #tpu.memory_space<vmem>>, vector<16x128xf32>
    %c0_i32_13 = arith.constant 0 : i32
    %c16_i32 = arith.constant 16 : i32
    %13 = arith.muli %c0_i32_13, %c16_i32 : i32
    %14 = tpu.assume_multiple %13, 8 : i32
    %15 = arith.index_cast %14 : i32 to index
    %c0_14 = arith.constant 0 : index
    %16 = vector.load %arg10[%15, %c0_14] : memref<128x384xf32, #tpu.memory_space<vmem>>, vector<16x384xf32>
    %17 = arith.truncf %12 : vector<16x128xf32> to vector<16x128xbf16>
    %c0_15 = arith.constant 0 : index
    %c0_16 = arith.constant 0 : index
    %18 = vector.load %arg4[%c0_15, %c0_16] : memref<128x384xbf16, #tpu.memory_space<vmem>>, vector<128x256xbf16>
    %cst_17 = arith.constant dense<0.000000e+00> : vector<16x256xf32>
    %19 = tpu.matmul %17, %18, %cst_17 {dimension_numbers = #tpu.dot_dimension_numbers<[1], [0], [0], [1], [0, 0, 1, 1], [], []>} : vector<16x128xbf16>, vector<128x256xbf16>, vector<16x256xf32> -> vector<16x256xf32>
    %c0_18 = arith.constant 0 : index
    %c256 = arith.constant 256 : index
    %20 = vector.load %arg4[%c0_18, %c256] : memref<128x384xbf16, #tpu.memory_space<vmem>>, vector<128x128xbf16>
    %cst_19 = arith.constant dense<0.000000e+00> : vector<16x128xf32>
    %21 = tpu.matmul %17, %20, %cst_19 {dimension_numbers = #tpu.dot_dimension_numbers<[1], [0], [0], [1], [0, 0, 1, 1], [], []>} : vector<16x128xbf16>, vector<128x128xbf16>, vector<16x128xf32> -> vector<16x128xf32>
    %22 = vector.extract_strided_slice %16 {offsets = [0, 0], sizes = [16, 128], strides = [1, 1]} : vector<16x384xf32> to vector<16x128xf32>
    %23 = vector.extract_strided_slice %19 {offsets = [0, 0], sizes = [16, 128], strides = [1, 1]} : vector<16x256xf32> to vector<16x128xf32>
    %24 = arith.addf %22, %23 : vector<16x128xf32>
    %25 = arith.negf %24 : vector<16x128xf32>
    %26 = math.exp %25 : vector<16x128xf32>
    %cst_20 = arith.constant 1.000000e+00 : f32
    %27 = vector.broadcast %cst_20 : f32 to vector<16x128xf32>
    %28 = arith.addf %27, %26 : vector<16x128xf32>
    %29 = arith.divf %27, %28 : vector<16x128xf32>
    %30 = vector.extract_strided_slice %16 {offsets = [0, 128], sizes = [16, 128], strides = [1, 1]} : vector<16x384xf32> to vector<16x128xf32>
    %31 = vector.extract_strided_slice %19 {offsets = [0, 128], sizes = [16, 128], strides = [1, 1]} : vector<16x256xf32> to vector<16x128xf32>
    %32 = arith.addf %30, %31 : vector<16x128xf32>
    %33 = arith.negf %32 : vector<16x128xf32>
    %34 = math.exp %33 : vector<16x128xf32>
    %cst_21 = arith.constant 1.000000e+00 : f32
    %35 = vector.broadcast %cst_21 : f32 to vector<16x128xf32>
    %36 = arith.addf %35, %34 : vector<16x128xf32>
    %37 = arith.divf %35, %36 : vector<16x128xf32>
    %38 = vector.extract_strided_slice %16 {offsets = [0, 256], sizes = [16, 128], strides = [1, 1]} : vector<16x384xf32> to vector<16x128xf32>
    %39 = vector.broadcast %11 : vector<1x128xf32> to vector<16x128xf32>
    %40 = arith.addf %21, %39 : vector<16x128xf32>
    %41 = arith.mulf %29, %40 : vector<16x128xf32>
    %42 = arith.addf %38, %41 : vector<16x128xf32>
    %43 = math.tanh %42 : vector<16x128xf32>
    %cst_22 = arith.constant 1.000000e+00 : f32
    %44 = vector.broadcast %cst_22 : f32 to vector<16x128xf32>
    %45 = arith.subf %44, %37 : vector<16x128xf32>
    %46 = arith.mulf %45, %43 : vector<16x128xf32>
    %47 = arith.mulf %37, %12 : vector<16x128xf32>
    %48 = arith.addf %46, %47 : vector<16x128xf32>
    %c1_i32 = arith.constant 1 : i32
    %c16_i32_23 = arith.constant 16 : i32
    %49 = arith.muli %c1_i32, %c16_i32_23 : i32
    %50 = tpu.assume_multiple %49, 8 : i32
    %51 = arith.index_cast %50 : i32 to index
    %c0_24 = arith.constant 0 : index
    %52 = vector.load %arg10[%51, %c0_24] : memref<128x384xf32, #tpu.memory_space<vmem>>, vector<16x384xf32>
    %53 = arith.truncf %48 : vector<16x128xf32> to vector<16x128xbf16>
    %c0_25 = arith.constant 0 : index
    %c0_26 = arith.constant 0 : index
    %54 = vector.load %arg4[%c0_25, %c0_26] : memref<128x384xbf16, #tpu.memory_space<vmem>>, vector<128x256xbf16>
    %cst_27 = arith.constant dense<0.000000e+00> : vector<16x256xf32>
    %55 = tpu.matmul %53, %54, %cst_27 {dimension_numbers = #tpu.dot_dimension_numbers<[1], [0], [0], [1], [0, 0, 1, 1], [], []>} : vector<16x128xbf16>, vector<128x256xbf16>, vector<16x256xf32> -> vector<16x256xf32>
    %c0_28 = arith.constant 0 : index
    %c256_29 = arith.constant 256 : index
    %56 = vector.load %arg4[%c0_28, %c256_29] : memref<128x384xbf16, #tpu.memory_space<vmem>>, vector<128x128xbf16>
    %cst_30 = arith.constant dense<0.000000e+00> : vector<16x128xf32>
    %57 = tpu.matmul %53, %56, %cst_30 {dimension_numbers = #tpu.dot_dimension_numbers<[1], [0], [0], [1], [0, 0, 1, 1], [], []>} : vector<16x128xbf16>, vector<128x128xbf16>, vector<16x128xf32> -> vector<16x128xf32>
    %58 = vector.extract_strided_slice %52 {offsets = [0, 0], sizes = [16, 128], strides = [1, 1]} : vector<16x384xf32> to vector<16x128xf32>
    %59 = vector.extract_strided_slice %55 {offsets = [0, 0], sizes = [16, 128], strides = [1, 1]} : vector<16x256xf32> to vector<16x128xf32>
    %60 = arith.addf %58, %59 : vector<16x128xf32>
    %61 = arith.negf %60 : vector<16x128xf32>
    %62 = math.exp %61 : vector<16x128xf32>
    %cst_31 = arith.constant 1.000000e+00 : f32
    %63 = vector.broadcast %cst_31 : f32 to vector<16x128xf32>
    %64 = arith.addf %63, %62 : vector<16x128xf32>
    %65 = arith.divf %63, %64 : vector<16x128xf32>
    %66 = vector.extract_strided_slice %52 {offsets = [0, 128], sizes = [16, 128], strides = [1, 1]} : vector<16x384xf32> to vector<16x128xf32>
    %67 = vector.extract_strided_slice %55 {offsets = [0, 128], sizes = [16, 128], strides = [1, 1]} : vector<16x256xf32> to vector<16x128xf32>
    %68 = arith.addf %66, %67 : vector<16x128xf32>
    %69 = arith.negf %68 : vector<16x128xf32>
    %70 = math.exp %69 : vector<16x128xf32>
    %cst_32 = arith.constant 1.000000e+00 : f32
    %71 = vector.broadcast %cst_32 : f32 to vector<16x128xf32>
    %72 = arith.addf %71, %70 : vector<16x128xf32>
    %73 = arith.divf %71, %72 : vector<16x128xf32>
    %74 = vector.extract_strided_slice %52 {offsets = [0, 256], sizes = [16, 128], strides = [1, 1]} : vector<16x384xf32> to vector<16x128xf32>
    %75 = vector.broadcast %11 : vector<1x128xf32> to vector<16x128xf32>
    %76 = arith.addf %57, %75 : vector<16x128xf32>
    %77 = arith.mulf %65, %76 : vector<16x128xf32>
    %78 = arith.addf %74, %77 : vector<16x128xf32>
    %79 = math.tanh %78 : vector<16x128xf32>
    %cst_33 = arith.constant 1.000000e+00 : f32
    %80 = vector.broadcast %cst_33 : f32 to vector<16x128xf32>
    %81 = arith.subf %80, %73 : vector<16x128xf32>
    %82 = arith.mulf %81, %79 : vector<16x128xf32>
    %83 = arith.mulf %73, %48 : vector<16x128xf32>
    %84 = arith.addf %82, %83 : vector<16x128xf32>
    %c2_i32 = arith.constant 2 : i32
    %c16_i32_34 = arith.constant 16 : i32
    %85 = arith.muli %c2_i32, %c16_i32_34 : i32
    %86 = tpu.assume_multiple %85, 8 : i32
    %87 = arith.index_cast %86 : i32 to index
    %c0_35 = arith.constant 0 : index
    %88 = vector.load %arg10[%87, %c0_35] : memref<128x384xf32, #tpu.memory_space<vmem>>, vector<16x384xf32>
    %89 = arith.truncf %84 : vector<16x128xf32> to vector<16x128xbf16>
    %c0_36 = arith.constant 0 : index
    %c0_37 = arith.constant 0 : index
    %90 = vector.load %arg4[%c0_36, %c0_37] : memref<128x384xbf16, #tpu.memory_space<vmem>>, vector<128x256xbf16>
    %cst_38 = arith.constant dense<0.000000e+00> : vector<16x256xf32>
    %91 = tpu.matmul %89, %90, %cst_38 {dimension_numbers = #tpu.dot_dimension_numbers<[1], [0], [0], [1], [0, 0, 1, 1], [], []>} : vector<16x128xbf16>, vector<128x256xbf16>, vector<16x256xf32> -> vector<16x256xf32>
    %c0_39 = arith.constant 0 : index
    %c256_40 = arith.constant 256 : index
    %92 = vector.load %arg4[%c0_39, %c256_40] : memref<128x384xbf16, #tpu.memory_space<vmem>>, vector<128x128xbf16>
    %cst_41 = arith.constant dense<0.000000e+00> : vector<16x128xf32>
    %93 = tpu.matmul %89, %92, %cst_41 {dimension_numbers = #tpu.dot_dimension_numbers<[1], [0], [0], [1], [0, 0, 1, 1], [], []>} : vector<16x128xbf16>, vector<128x128xbf16>, vector<16x128xf32> -> vector<16x128xf32>
    %94 = vector.extract_strided_slice %88 {offsets = [0, 0], sizes = [16, 128], strides = [1, 1]} : vector<16x384xf32> to vector<16x128xf32>
    %95 = vector.extract_strided_slice %91 {offsets = [0, 0], sizes = [16, 128], strides = [1, 1]} : vector<16x256xf32> to vector<16x128xf32>
    %96 = arith.addf %94, %95 : vector<16x128xf32>
    %97 = arith.negf %96 : vector<16x128xf32>
    %98 = math.exp %97 : vector<16x128xf32>
    %cst_42 = arith.constant 1.000000e+00 : f32
    %99 = vector.broadcast %cst_42 : f32 to vector<16x128xf32>
    %100 = arith.addf %99, %98 : vector<16x128xf32>
    %101 = arith.divf %99, %100 : vector<16x128xf32>
    %102 = vector.extract_strided_slice %88 {offsets = [0, 128], sizes = [16, 128], strides = [1, 1]} : vector<16x384xf32> to vector<16x128xf32>
    %103 = vector.extract_strided_slice %91 {offsets = [0, 128], sizes = [16, 128], strides = [1, 1]} : vector<16x256xf32> to vector<16x128xf32>
    %104 = arith.addf %102, %103 : vector<16x128xf32>
    %105 = arith.negf %104 : vector<16x128xf32>
    %106 = math.exp %105 : vector<16x128xf32>
    %cst_43 = arith.constant 1.000000e+00 : f32
    %107 = vector.broadcast %cst_43 : f32 to vector<16x128xf32>
    %108 = arith.addf %107, %106 : vector<16x128xf32>
    %109 = arith.divf %107, %108 : vector<16x128xf32>
    %110 = vector.extract_strided_slice %88 {offsets = [0, 256], sizes = [16, 128], strides = [1, 1]} : vector<16x384xf32> to vector<16x128xf32>
    %111 = vector.broadcast %11 : vector<1x128xf32> to vector<16x128xf32>
    %112 = arith.addf %93, %111 : vector<16x128xf32>
    %113 = arith.mulf %101, %112 : vector<16x128xf32>
    %114 = arith.addf %110, %113 : vector<16x128xf32>
    %115 = math.tanh %114 : vector<16x128xf32>
    %cst_44 = arith.constant 1.000000e+00 : f32
    %116 = vector.broadcast %cst_44 : f32 to vector<16x128xf32>
    %117 = arith.subf %116, %109 : vector<16x128xf32>
    %118 = arith.mulf %117, %115 : vector<16x128xf32>
    %119 = arith.mulf %109, %84 : vector<16x128xf32>
    %120 = arith.addf %118, %119 : vector<16x128xf32>
    %c3_i32 = arith.constant 3 : i32
    %c16_i32_45 = arith.constant 16 : i32
    %121 = arith.muli %c3_i32, %c16_i32_45 : i32
    %122 = tpu.assume_multiple %121, 8 : i32
    %123 = arith.index_cast %122 : i32 to index
    %c0_46 = arith.constant 0 : index
    %124 = vector.load %arg10[%123, %c0_46] : memref<128x384xf32, #tpu.memory_space<vmem>>, vector<16x384xf32>
    %125 = arith.truncf %120 : vector<16x128xf32> to vector<16x128xbf16>
    %c0_47 = arith.constant 0 : index
    %c0_48 = arith.constant 0 : index
    %126 = vector.load %arg4[%c0_47, %c0_48] : memref<128x384xbf16, #tpu.memory_space<vmem>>, vector<128x256xbf16>
    %cst_49 = arith.constant dense<0.000000e+00> : vector<16x256xf32>
    %127 = tpu.matmul %125, %126, %cst_49 {dimension_numbers = #tpu.dot_dimension_numbers<[1], [0], [0], [1], [0, 0, 1, 1], [], []>} : vector<16x128xbf16>, vector<128x256xbf16>, vector<16x256xf32> -> vector<16x256xf32>
    %c0_50 = arith.constant 0 : index
    %c256_51 = arith.constant 256 : index
    %128 = vector.load %arg4[%c0_50, %c256_51] : memref<128x384xbf16, #tpu.memory_space<vmem>>, vector<128x128xbf16>
    %cst_52 = arith.constant dense<0.000000e+00> : vector<16x128xf32>
    %129 = tpu.matmul %125, %128, %cst_52 {dimension_numbers = #tpu.dot_dimension_numbers<[1], [0], [0], [1], [0, 0, 1, 1], [], []>} : vector<16x128xbf16>, vector<128x128xbf16>, vector<16x128xf32> -> vector<16x128xf32>
    %130 = vector.extract_strided_slice %124 {offsets = [0, 0], sizes = [16, 128], strides = [1, 1]} : vector<16x384xf32> to vector<16x128xf32>
    %131 = vector.extract_strided_slice %127 {offsets = [0, 0], sizes = [16, 128], strides = [1, 1]} : vector<16x256xf32> to vector<16x128xf32>
    %132 = arith.addf %130, %131 : vector<16x128xf32>
    %133 = arith.negf %132 : vector<16x128xf32>
    %134 = math.exp %133 : vector<16x128xf32>
    %cst_53 = arith.constant 1.000000e+00 : f32
    %135 = vector.broadcast %cst_53 : f32 to vector<16x128xf32>
    %136 = arith.addf %135, %134 : vector<16x128xf32>
    %137 = arith.divf %135, %136 : vector<16x128xf32>
    %138 = vector.extract_strided_slice %124 {offsets = [0, 128], sizes = [16, 128], strides = [1, 1]} : vector<16x384xf32> to vector<16x128xf32>
    %139 = vector.extract_strided_slice %127 {offsets = [0, 128], sizes = [16, 128], strides = [1, 1]} : vector<16x256xf32> to vector<16x128xf32>
    %140 = arith.addf %138, %139 : vector<16x128xf32>
    %141 = arith.negf %140 : vector<16x128xf32>
    %142 = math.exp %141 : vector<16x128xf32>
    %cst_54 = arith.constant 1.000000e+00 : f32
    %143 = vector.broadcast %cst_54 : f32 to vector<16x128xf32>
    %144 = arith.addf %143, %142 : vector<16x128xf32>
    %145 = arith.divf %143, %144 : vector<16x128xf32>
    %146 = vector.extract_strided_slice %124 {offsets = [0, 256], sizes = [16, 128], strides = [1, 1]} : vector<16x384xf32> to vector<16x128xf32>
    %147 = vector.broadcast %11 : vector<1x128xf32> to vector<16x128xf32>
    %148 = arith.addf %129, %147 : vector<16x128xf32>
    %149 = arith.mulf %137, %148 : vector<16x128xf32>
    %150 = arith.addf %146, %149 : vector<16x128xf32>
    %151 = math.tanh %150 : vector<16x128xf32>
    %cst_55 = arith.constant 1.000000e+00 : f32
    %152 = vector.broadcast %cst_55 : f32 to vector<16x128xf32>
    %153 = arith.subf %152, %145 : vector<16x128xf32>
    %154 = arith.mulf %153, %151 : vector<16x128xf32>
    %155 = arith.mulf %145, %120 : vector<16x128xf32>
    %156 = arith.addf %154, %155 : vector<16x128xf32>
    %c4_i32 = arith.constant 4 : i32
    %c16_i32_56 = arith.constant 16 : i32
    %157 = arith.muli %c4_i32, %c16_i32_56 : i32
    %158 = tpu.assume_multiple %157, 8 : i32
    %159 = arith.index_cast %158 : i32 to index
    %c0_57 = arith.constant 0 : index
    %160 = vector.load %arg10[%159, %c0_57] : memref<128x384xf32, #tpu.memory_space<vmem>>, vector<16x384xf32>
    %161 = arith.truncf %156 : vector<16x128xf32> to vector<16x128xbf16>
    %c0_58 = arith.constant 0 : index
    %c0_59 = arith.constant 0 : index
    %162 = vector.load %arg4[%c0_58, %c0_59] : memref<128x384xbf16, #tpu.memory_space<vmem>>, vector<128x256xbf16>
    %cst_60 = arith.constant dense<0.000000e+00> : vector<16x256xf32>
    %163 = tpu.matmul %161, %162, %cst_60 {dimension_numbers = #tpu.dot_dimension_numbers<[1], [0], [0], [1], [0, 0, 1, 1], [], []>} : vector<16x128xbf16>, vector<128x256xbf16>, vector<16x256xf32> -> vector<16x256xf32>
    %c0_61 = arith.constant 0 : index
    %c256_62 = arith.constant 256 : index
    %164 = vector.load %arg4[%c0_61, %c256_62] : memref<128x384xbf16, #tpu.memory_space<vmem>>, vector<128x128xbf16>
    %cst_63 = arith.constant dense<0.000000e+00> : vector<16x128xf32>
    %165 = tpu.matmul %161, %164, %cst_63 {dimension_numbers = #tpu.dot_dimension_numbers<[1], [0], [0], [1], [0, 0, 1, 1], [], []>} : vector<16x128xbf16>, vector<128x128xbf16>, vector<16x128xf32> -> vector<16x128xf32>
    %166 = vector.extract_strided_slice %160 {offsets = [0, 0], sizes = [16, 128], strides = [1, 1]} : vector<16x384xf32> to vector<16x128xf32>
    %167 = vector.extract_strided_slice %163 {offsets = [0, 0], sizes = [16, 128], strides = [1, 1]} : vector<16x256xf32> to vector<16x128xf32>
    %168 = arith.addf %166, %167 : vector<16x128xf32>
    %169 = arith.negf %168 : vector<16x128xf32>
    %170 = math.exp %169 : vector<16x128xf32>
    %cst_64 = arith.constant 1.000000e+00 : f32
    %171 = vector.broadcast %cst_64 : f32 to vector<16x128xf32>
    %172 = arith.addf %171, %170 : vector<16x128xf32>
    %173 = arith.divf %171, %172 : vector<16x128xf32>
    %174 = vector.extract_strided_slice %160 {offsets = [0, 128], sizes = [16, 128], strides = [1, 1]} : vector<16x384xf32> to vector<16x128xf32>
    %175 = vector.extract_strided_slice %163 {offsets = [0, 128], sizes = [16, 128], strides = [1, 1]} : vector<16x256xf32> to vector<16x128xf32>
    %176 = arith.addf %174, %175 : vector<16x128xf32>
    %177 = arith.negf %176 : vector<16x128xf32>
    %178 = math.exp %177 : vector<16x128xf32>
    %cst_65 = arith.constant 1.000000e+00 : f32
    %179 = vector.broadcast %cst_65 : f32 to vector<16x128xf32>
    %180 = arith.addf %179, %178 : vector<16x128xf32>
    %181 = arith.divf %179, %180 : vector<16x128xf32>
    %182 = vector.extract_strided_slice %160 {offsets = [0, 256], sizes = [16, 128], strides = [1, 1]} : vector<16x384xf32> to vector<16x128xf32>
    %183 = vector.broadcast %11 : vector<1x128xf32> to vector<16x128xf32>
    %184 = arith.addf %165, %183 : vector<16x128xf32>
    %185 = arith.mulf %173, %184 : vector<16x128xf32>
    %186 = arith.addf %182, %185 : vector<16x128xf32>
    %187 = math.tanh %186 : vector<16x128xf32>
    %cst_66 = arith.constant 1.000000e+00 : f32
    %188 = vector.broadcast %cst_66 : f32 to vector<16x128xf32>
    %189 = arith.subf %188, %181 : vector<16x128xf32>
    %190 = arith.mulf %189, %187 : vector<16x128xf32>
    %191 = arith.mulf %181, %156 : vector<16x128xf32>
    %192 = arith.addf %190, %191 : vector<16x128xf32>
    %c5_i32 = arith.constant 5 : i32
    %c16_i32_67 = arith.constant 16 : i32
    %193 = arith.muli %c5_i32, %c16_i32_67 : i32
    %194 = tpu.assume_multiple %193, 8 : i32
    %195 = arith.index_cast %194 : i32 to index
    %c0_68 = arith.constant 0 : index
    %196 = vector.load %arg10[%195, %c0_68] : memref<128x384xf32, #tpu.memory_space<vmem>>, vector<16x384xf32>
    %197 = arith.truncf %192 : vector<16x128xf32> to vector<16x128xbf16>
    %c0_69 = arith.constant 0 : index
    %c0_70 = arith.constant 0 : index
    %198 = vector.load %arg4[%c0_69, %c0_70] : memref<128x384xbf16, #tpu.memory_space<vmem>>, vector<128x256xbf16>
    %cst_71 = arith.constant dense<0.000000e+00> : vector<16x256xf32>
    %199 = tpu.matmul %197, %198, %cst_71 {dimension_numbers = #tpu.dot_dimension_numbers<[1], [0], [0], [1], [0, 0, 1, 1], [], []>} : vector<16x128xbf16>, vector<128x256xbf16>, vector<16x256xf32> -> vector<16x256xf32>
    %c0_72 = arith.constant 0 : index
    %c256_73 = arith.constant 256 : index
    %200 = vector.load %arg4[%c0_72, %c256_73] : memref<128x384xbf16, #tpu.memory_space<vmem>>, vector<128x128xbf16>
    %cst_74 = arith.constant dense<0.000000e+00> : vector<16x128xf32>
    %201 = tpu.matmul %197, %200, %cst_74 {dimension_numbers = #tpu.dot_dimension_numbers<[1], [0], [0], [1], [0, 0, 1, 1], [], []>} : vector<16x128xbf16>, vector<128x128xbf16>, vector<16x128xf32> -> vector<16x128xf32>
    %202 = vector.extract_strided_slice %196 {offsets = [0, 0], sizes = [16, 128], strides = [1, 1]} : vector<16x384xf32> to vector<16x128xf32>
    %203 = vector.extract_strided_slice %199 {offsets = [0, 0], sizes = [16, 128], strides = [1, 1]} : vector<16x256xf32> to vector<16x128xf32>
    %204 = arith.addf %202, %203 : vector<16x128xf32>
    %205 = arith.negf %204 : vector<16x128xf32>
    %206 = math.exp %205 : vector<16x128xf32>
    %cst_75 = arith.constant 1.000000e+00 : f32
    %207 = vector.broadcast %cst_75 : f32 to vector<16x128xf32>
    %208 = arith.addf %207, %206 : vector<16x128xf32>
    %209 = arith.divf %207, %208 : vector<16x128xf32>
    %210 = vector.extract_strided_slice %196 {offsets = [0, 128], sizes = [16, 128], strides = [1, 1]} : vector<16x384xf32> to vector<16x128xf32>
    %211 = vector.extract_strided_slice %199 {offsets = [0, 128], sizes = [16, 128], strides = [1, 1]} : vector<16x256xf32> to vector<16x128xf32>
    %212 = arith.addf %210, %211 : vector<16x128xf32>
    %213 = arith.negf %212 : vector<16x128xf32>
    %214 = math.exp %213 : vector<16x128xf32>
    %cst_76 = arith.constant 1.000000e+00 : f32
    %215 = vector.broadcast %cst_76 : f32 to vector<16x128xf32>
    %216 = arith.addf %215, %214 : vector<16x128xf32>
    %217 = arith.divf %215, %216 : vector<16x128xf32>
    %218 = vector.extract_strided_slice %196 {offsets = [0, 256], sizes = [16, 128], strides = [1, 1]} : vector<16x384xf32> to vector<16x128xf32>
    %219 = vector.broadcast %11 : vector<1x128xf32> to vector<16x128xf32>
    %220 = arith.addf %201, %219 : vector<16x128xf32>
    %221 = arith.mulf %209, %220 : vector<16x128xf32>
    %222 = arith.addf %218, %221 : vector<16x128xf32>
    %223 = math.tanh %222 : vector<16x128xf32>
    %cst_77 = arith.constant 1.000000e+00 : f32
    %224 = vector.broadcast %cst_77 : f32 to vector<16x128xf32>
    %225 = arith.subf %224, %217 : vector<16x128xf32>
    %226 = arith.mulf %225, %223 : vector<16x128xf32>
    %227 = arith.mulf %217, %192 : vector<16x128xf32>
    %228 = arith.addf %226, %227 : vector<16x128xf32>
    %c6_i32 = arith.constant 6 : i32
    %c16_i32_78 = arith.constant 16 : i32
    %229 = arith.muli %c6_i32, %c16_i32_78 : i32
    %230 = tpu.assume_multiple %229, 8 : i32
    %231 = arith.index_cast %230 : i32 to index
    %c0_79 = arith.constant 0 : index
    %232 = vector.load %arg10[%231, %c0_79] : memref<128x384xf32, #tpu.memory_space<vmem>>, vector<16x384xf32>
    %233 = arith.truncf %228 : vector<16x128xf32> to vector<16x128xbf16>
    %c0_80 = arith.constant 0 : index
    %c0_81 = arith.constant 0 : index
    %234 = vector.load %arg4[%c0_80, %c0_81] : memref<128x384xbf16, #tpu.memory_space<vmem>>, vector<128x256xbf16>
    %cst_82 = arith.constant dense<0.000000e+00> : vector<16x256xf32>
    %235 = tpu.matmul %233, %234, %cst_82 {dimension_numbers = #tpu.dot_dimension_numbers<[1], [0], [0], [1], [0, 0, 1, 1], [], []>} : vector<16x128xbf16>, vector<128x256xbf16>, vector<16x256xf32> -> vector<16x256xf32>
    %c0_83 = arith.constant 0 : index
    %c256_84 = arith.constant 256 : index
    %236 = vector.load %arg4[%c0_83, %c256_84] : memref<128x384xbf16, #tpu.memory_space<vmem>>, vector<128x128xbf16>
    %cst_85 = arith.constant dense<0.000000e+00> : vector<16x128xf32>
    %237 = tpu.matmul %233, %236, %cst_85 {dimension_numbers = #tpu.dot_dimension_numbers<[1], [0], [0], [1], [0, 0, 1, 1], [], []>} : vector<16x128xbf16>, vector<128x128xbf16>, vector<16x128xf32> -> vector<16x128xf32>
    %238 = vector.extract_strided_slice %232 {offsets = [0, 0], sizes = [16, 128], strides = [1, 1]} : vector<16x384xf32> to vector<16x128xf32>
    %239 = vector.extract_strided_slice %235 {offsets = [0, 0], sizes = [16, 128], strides = [1, 1]} : vector<16x256xf32> to vector<16x128xf32>
    %240 = arith.addf %238, %239 : vector<16x128xf32>
    %241 = arith.negf %240 : vector<16x128xf32>
    %242 = math.exp %241 : vector<16x128xf32>
    %cst_86 = arith.constant 1.000000e+00 : f32
    %243 = vector.broadcast %cst_86 : f32 to vector<16x128xf32>
    %244 = arith.addf %243, %242 : vector<16x128xf32>
    %245 = arith.divf %243, %244 : vector<16x128xf32>
    %246 = vector.extract_strided_slice %232 {offsets = [0, 128], sizes = [16, 128], strides = [1, 1]} : vector<16x384xf32> to vector<16x128xf32>
    %247 = vector.extract_strided_slice %235 {offsets = [0, 128], sizes = [16, 128], strides = [1, 1]} : vector<16x256xf32> to vector<16x128xf32>
    %248 = arith.addf %246, %247 : vector<16x128xf32>
    %249 = arith.negf %248 : vector<16x128xf32>
    %250 = math.exp %249 : vector<16x128xf32>
    %cst_87 = arith.constant 1.000000e+00 : f32
    %251 = vector.broadcast %cst_87 : f32 to vector<16x128xf32>
    %252 = arith.addf %251, %250 : vector<16x128xf32>
    %253 = arith.divf %251, %252 : vector<16x128xf32>
    %254 = vector.extract_strided_slice %232 {offsets = [0, 256], sizes = [16, 128], strides = [1, 1]} : vector<16x384xf32> to vector<16x128xf32>
    %255 = vector.broadcast %11 : vector<1x128xf32> to vector<16x128xf32>
    %256 = arith.addf %237, %255 : vector<16x128xf32>
    %257 = arith.mulf %245, %256 : vector<16x128xf32>
    %258 = arith.addf %254, %257 : vector<16x128xf32>
    %259 = math.tanh %258 : vector<16x128xf32>
    %cst_88 = arith.constant 1.000000e+00 : f32
    %260 = vector.broadcast %cst_88 : f32 to vector<16x128xf32>
    %261 = arith.subf %260, %253 : vector<16x128xf32>
    %262 = arith.mulf %261, %259 : vector<16x128xf32>
    %263 = arith.mulf %253, %228 : vector<16x128xf32>
    %264 = arith.addf %262, %263 : vector<16x128xf32>
    %c7_i32 = arith.constant 7 : i32
    %c16_i32_89 = arith.constant 16 : i32
    %265 = arith.muli %c7_i32, %c16_i32_89 : i32
    %266 = tpu.assume_multiple %265, 8 : i32
    %267 = arith.index_cast %266 : i32 to index
    %c0_90 = arith.constant 0 : index
    %268 = vector.load %arg10[%267, %c0_90] : memref<128x384xf32, #tpu.memory_space<vmem>>, vector<16x384xf32>
    %269 = arith.truncf %264 : vector<16x128xf32> to vector<16x128xbf16>
    %c0_91 = arith.constant 0 : index
    %c0_92 = arith.constant 0 : index
    %270 = vector.load %arg4[%c0_91, %c0_92] : memref<128x384xbf16, #tpu.memory_space<vmem>>, vector<128x256xbf16>
    %cst_93 = arith.constant dense<0.000000e+00> : vector<16x256xf32>
    %271 = tpu.matmul %269, %270, %cst_93 {dimension_numbers = #tpu.dot_dimension_numbers<[1], [0], [0], [1], [0, 0, 1, 1], [], []>} : vector<16x128xbf16>, vector<128x256xbf16>, vector<16x256xf32> -> vector<16x256xf32>
    %c0_94 = arith.constant 0 : index
    %c256_95 = arith.constant 256 : index
    %272 = vector.load %arg4[%c0_94, %c256_95] : memref<128x384xbf16, #tpu.memory_space<vmem>>, vector<128x128xbf16>
    %cst_96 = arith.constant dense<0.000000e+00> : vector<16x128xf32>
    %273 = tpu.matmul %269, %272, %cst_96 {dimension_numbers = #tpu.dot_dimension_numbers<[1], [0], [0], [1], [0, 0, 1, 1], [], []>} : vector<16x128xbf16>, vector<128x128xbf16>, vector<16x128xf32> -> vector<16x128xf32>
    %274 = vector.extract_strided_slice %268 {offsets = [0, 0], sizes = [16, 128], strides = [1, 1]} : vector<16x384xf32> to vector<16x128xf32>
    %275 = vector.extract_strided_slice %271 {offsets = [0, 0], sizes = [16, 128], strides = [1, 1]} : vector<16x256xf32> to vector<16x128xf32>
    %276 = arith.addf %274, %275 : vector<16x128xf32>
    %277 = arith.negf %276 : vector<16x128xf32>
    %278 = math.exp %277 : vector<16x128xf32>
    %cst_97 = arith.constant 1.000000e+00 : f32
    %279 = vector.broadcast %cst_97 : f32 to vector<16x128xf32>
    %280 = arith.addf %279, %278 : vector<16x128xf32>
    %281 = arith.divf %279, %280 : vector<16x128xf32>
    %282 = vector.extract_strided_slice %268 {offsets = [0, 128], sizes = [16, 128], strides = [1, 1]} : vector<16x384xf32> to vector<16x128xf32>
    %283 = vector.extract_strided_slice %271 {offsets = [0, 128], sizes = [16, 128], strides = [1, 1]} : vector<16x256xf32> to vector<16x128xf32>
    %284 = arith.addf %282, %283 : vector<16x128xf32>
    %285 = arith.negf %284 : vector<16x128xf32>
    %286 = math.exp %285 : vector<16x128xf32>
    %cst_98 = arith.constant 1.000000e+00 : f32
    %287 = vector.broadcast %cst_98 : f32 to vector<16x128xf32>
    %288 = arith.addf %287, %286 : vector<16x128xf32>
    %289 = arith.divf %287, %288 : vector<16x128xf32>
    %290 = vector.extract_strided_slice %268 {offsets = [0, 256], sizes = [16, 128], strides = [1, 1]} : vector<16x384xf32> to vector<16x128xf32>
    %291 = vector.broadcast %11 : vector<1x128xf32> to vector<16x128xf32>
    %292 = arith.addf %273, %291 : vector<16x128xf32>
    %293 = arith.mulf %281, %292 : vector<16x128xf32>
    %294 = arith.addf %290, %293 : vector<16x128xf32>
    %295 = math.tanh %294 : vector<16x128xf32>
    %cst_99 = arith.constant 1.000000e+00 : f32
    %296 = vector.broadcast %cst_99 : f32 to vector<16x128xf32>
    %297 = arith.subf %296, %289 : vector<16x128xf32>
    %298 = arith.mulf %297, %295 : vector<16x128xf32>
    %299 = arith.mulf %289, %264 : vector<16x128xf32>
    %300 = arith.addf %298, %299 : vector<16x128xf32>
    %c8_i32 = arith.constant 8 : i32
    %c0_100 = arith.constant 0 : index
    %c0_101 = arith.constant 0 : index
    %301 = vector.load %arg11[%c0_100, %c0_101] : memref<16x128xf32, #tpu.memory_space<vmem>>, vector<16x128xf32>
    tpu.vector_store %arg11[%c0_100, %c0_101], %300 {strides = array<i32>} : memref<16x128xf32, #tpu.memory_space<vmem>>, vector<16x128xf32>,
    %c0_i32_102 = arith.constant 0 : i32
    %302 = arith.cmpi eq, %arg1, %c0_i32_102 : i32
    %303 = arith.extui %302 : i1 to i32
    %c0_i32_103 = arith.constant 0 : i32
    %304 = arith.cmpi ne, %303, %c0_i32_103 : i32
    scf.if %304 {
      %305 = arith.truncf %300 : vector<16x128xf32> to vector<16x128xbf16>
      %c0_104 = arith.constant 0 : index
      %c0_105 = arith.constant 0 : index
      %306 = vector.load %arg7[%c0_104, %c0_105] : memref<128x128xbf16, #tpu.memory_space<vmem>>, vector<128x128xbf16>
      %cst_106 = arith.constant dense<0.000000e+00> : vector<16x128xf32>
      %307 = tpu.matmul %305, %306, %cst_106 {dimension_numbers = #tpu.dot_dimension_numbers<[1], [0], [0], [1], [0, 0, 1, 1], [], []>} : vector<16x128xbf16>, vector<128x128xbf16>, vector<16x128xf32> -> vector<16x128xf32>
      %c0_107 = arith.constant 0 : index
      %c0_108 = arith.constant 0 : index
      %308 = vector.load %arg8[%c0_107, %c0_108] : memref<1x128xf32, #tpu.memory_space<vmem>>, vector<1x128xf32>
      %309 = vector.broadcast %308 : vector<1x128xf32> to vector<16x128xf32>
      %310 = arith.addf %307, %309 : vector<16x128xf32>
      %c0_109 = arith.constant 0 : index
      %c0_110 = arith.constant 0 : index
      %311 = vector.load %arg9[%c0_109, %c0_110] : memref<16x128xf32, #tpu.memory_space<vmem>>, vector<16x128xf32>
      tpu.vector_store %arg9[%c0_109, %c0_110], %310 {strides = array<i32>} : memref<16x128xf32, #tpu.memory_space<vmem>>, vector<16x128xf32>,
    } else {
    }
    return
  }
  func.func @transform_0(%arg0: i32, %arg1: i32) -> (i32, i32, i32) {
    %c0_i32 = arith.constant 0 : i32
    %c0_i32_0 = arith.constant 0 : i32
    return %arg0, %arg1, %c0_i32 : i32, i32, i32
  }
  func.func @transform_1(%arg0: i32, %arg1: i32) -> (i32, i32) {
    %c0_i32 = arith.constant 0 : i32
    %c0_i32_0 = arith.constant 0 : i32
    %c0_i32_1 = arith.constant 0 : i32
    return %c0_i32, %c0_i32_0 : i32, i32
  }
  func.func @transform_2(%arg0: i32, %arg1: i32) -> (i32, i32) {
    %c0_i32 = arith.constant 0 : i32
    %c0_i32_0 = arith.constant 0 : i32
    %c0_i32_1 = arith.constant 0 : i32
    return %c0_i32, %c0_i32_0 : i32, i32
  }
  func.func @transform_3(%arg0: i32, %arg1: i32) -> (i32, i32) {
    %c0_i32 = arith.constant 0 : i32
    %c0_i32_0 = arith.constant 0 : i32
    %c0_i32_1 = arith.constant 0 : i32
    return %c0_i32, %c0_i32_0 : i32, i32
  }
  func.func @transform_4(%arg0: i32, %arg1: i32) -> (i32, i32) {
    %c0_i32 = arith.constant 0 : i32
    %c0_i32_0 = arith.constant 0 : i32
    %c0_i32_1 = arith.constant 0 : i32
    return %c0_i32, %c0_i32_0 : i32, i32
  }
  func.func @transform_5(%arg0: i32, %arg1: i32) -> (i32, i32) {
    %c0_i32 = arith.constant 0 : i32
    %c0_i32_0 = arith.constant 0 : i32
    %c0_i32_1 = arith.constant 0 : i32
    return %c0_i32, %c0_i32_0 : i32, i32
  }
  func.func @transform_6(%arg0: i32, %arg1: i32) -> (i32, i32) {
    %c0_i32 = arith.constant 0 : i32
    %c0_i32_0 = arith.constant 0 : i32
    %c0_i32_1 = arith.constant 0 : i32
    return %c0_i32, %c0_i32_0 : i32, i32
  }
  func.func @transform_7(%arg0: i32, %arg1: i32) -> (i32, i32) {
    %c0_i32 = arith.constant 0 : i32
    %c0_i32_0 = arith.constant 0 : i32
    return %arg0, %c0_i32 : i32, i32
  }
}

</mosaic_0001>

<bundles_post_ra>
// kernel: rnn_position_model.1
= control target key start
LH: loop header
LB: loop body
LE: loop exit
PB: predicated region body
PF: predicated region fallthrough
CT: control target
= control target key end

     0   :  { %v3410_v1 = vmov 0   ;;  %vm146_vm0 = vcmask 261120   ;;  %v3412_v12 = vmov 0.0   ;;  %v2451_v39 = vmov 0.0|0.0   ;;  %s3402_s1 = inlined_call_operand.vmem [shape: bf16[32,384], index: 1, kind: input, shape index: {}]   ;;  %s3403_s0 = inlined_call_operand.vmem [shape: bf16[1,128,32], index: 0, kind: input, shape index: {}]   ;;  %s3404_s2 = inlined_call_operand.vmem [shape: bf16[128,384], index: 2, kind: input, shape index: {}]   ;;  %s3405_s3 = inlined_call_operand.vmem [shape: f32[1,384], index: 3, kind: input, shape index: {}]   ;;  %s3406_s4 = inlined_call_operand.vmem [shape: f32[1,128], index: 4, kind: input, shape index: {}]   ;;  %s3407_s5 = inlined_call_operand.vmem [shape: bf16[128,128], index: 5, kind: input, shape index: {}]   ;;  %s3408_s6 = inlined_call_operand.vmem [shape: f32[1,128], index: 6, kind: input, shape index: {}]   ;;  %s3409_s7 = inlined_call_operand.vmem [shape: f32[16,128], index: 7, kind: output, shape index: {}]  }
   0x1   :  { %v2208_v0 = vld [vmem:[%s3402_s1 + $0x1c] ss:$12 sps:$4 sm:$0xff]   ;;  %203 = vmatprep.mubr.bf16.mxu0 %v3410_v1  ;;  %v2210_v2 = vld [vmem:[%s3402_s1 + $0x20] ss:$12 sps:$4 sm:$0xff]   ;;  %v2211_v3 = vld [vmem:[%s3402_s1 + $0x18] ss:$12 sps:$4 sm:$0xff]   ;;  %v59_v41 = vlaneseq }
   0x2   :  { %183 = vmatprep.subr.bf16.mxu0 %v2208_v0  ;;  %2004 = vmatprep.subr.bf16.mxu1 %v2210_v2  ;;  %v2212_v4 = vld [vmem:[%s3402_s1 + $0x4] ss:$12 sps:$4 sm:$0xff]   ;;  %v2214_v5 = vld [vmem:[%s3402_s1 + $0x8] ss:$12 sps:$4 sm:$0xff]   ;;  %v2215_v6 = vld [vmem:[%s3402_s1] ss:$12 sps:$4 sm:$0xff]  }
   0x3   :  { %184 = vmatpush1.bf16.msra.mxu0 %v2211_v3  ;;  %2005 = vmatpush3.bf16.msra.mxu1 %v2210_v2  ;;  %v2216_v7 = vld [vmem:[%s3403_s0] sm:$0xff]   ;;  %v2217_v8 = vld [vmem:[%s3403_s0 + $0x8] sm:$0xff]   ;;  %v2532_v11 = vld [vmem:[%s3404_s2 + $0xb0] ss:$12 sps:$4 sm:$0xff]   ;;  %vm2452_vm1 = vmmov 0   ;;  %v60_v42 = vshrl.u32 %v59_v41, 7 }
   0x4   :  { %185 = vmatprep.subr.bf16.mxu0 %v2212_v4  ;;  %2006 = vmatprep.subr.bf16.mxu1 %v2214_v5  ;;  %v2522_v9 = vld [vmem:[%s3404_s2 + $0xac] ss:$12 sps:$4 sm:$0xff]   ;;  %v2527_v10 = vld [vmem:[%s3404_s2 + $0xa8] ss:$12 sps:$4 sm:$0xff]   ;;  %v2551_v15 = vld [vmem:[%s3404_s2 + $0x90] ss:$12 sps:$4 sm:$0xff]  }
   0x5   :  { %2008 = vmatprep.mubr.msk.bf16.mxu1 %vm146_vm0, %v2216_v7  ;;  %v2539_v13 = vld [vmem:[%s3404_s2 + $0x94] ss:$12 sps:$4 sm:$0xff]   ;;  %v2558_v16 = vld [vmem:[%s3404_s2 + $0x7c] ss:$12 sps:$4 sm:$0xff]   ;;  %v2565_v17 = vld [vmem:[%s3404_s2 + $0x98] ss:$12 sps:$4 sm:$0xff]  }
   0x6   :  { %v2225_v14 = vld [vmem:[%s3403_s0 + $0x10] sm:$0xff]   ;;  %v2226_v18 = vld [vmem:[%s3403_s0 + $0x18] sm:$0xff]   ;;  %v2234_v21 = vld [vmem:[%s3403_s0 + $0x20] sm:$0xff]   ;;  %v69_v43 = vsub.s32 2, %v60_v42  ;;  %v61_v51 = vsub.s32 0, %v60_v42  ;;  %v65_v54 = vsub.s32 1, %v60_v42 }
   0x7   :  { %186 = vmatpush1.bf16.msra.mxu0 %v2215_v6  ;;  %2007 = vmatpush3.bf16.msra.mxu1 %v2214_v5  ;;  %v2573_v19 = vld [vmem:[%s3404_s2 + $0x78] ss:$12 sps:$4 sm:$0xff]   ;;  %v2592_v22 = vld [vmem:[%s3404_s2 + $0x60] ss:$12 sps:$4 sm:$0xff]   ;;  %v2617_v26 = vld [vmem:[%s3404_s2 + $0x48] ss:$12 sps:$4 sm:$0xff]  }
   0x8   :  { %538 = vmatprep.subr.bf16.mxu1 %v2522_v9  ;;  %2024 = vmatprep.subr.bf16.mxu0 %v3412_v12  ;;  %v2580_v20 = vld [vmem:[%s3404_s2 + $0x64] ss:$12 sps:$4 sm:$0xff]   ;;  %v2599_v23 = vld [vmem:[%s3404_s2 + $0x80] ss:$12 sps:$4 sm:$0xff]   ;;  %v2631_v29 = vld [vmem:[%s3404_s2 + $0x68] ss:$12 sps:$4 sm:$0xff]  }
   0x9   :  { %v2606_v24 = vld [vmem:[%s3404_s2 + $0x4c] ss:$12 sps:$4 sm:$0xff]   ;;  %v2622_v27 = vld [vmem:[%s3404_s2 + $0x34] ss:$12 sps:$4 sm:$0xff]   ;;  %v2639_v30 = vld [vmem:[%s3404_s2 + $0x30] ss:$12 sps:$4 sm:$0xff]  }
   0xa   :  { %1831 = vmatmul.mubr.msk.bf16.vlgmr.msra.gmra.mxu0 %vm146_vm0, %v2216_v7  ;;  %2009 = vmatmul.mubr.msk.bf16.vlgmr.msra.gmra.mxu1 %vm146_vm0, %v2217_v8  ;;  %v2235_v25 = vld [vmem:[%s3403_s0 + $0x28] sm:$0xff]   ;;  %v2243_v28 = vld [vmem:[%s3403_s0 + $0x30] sm:$0xff]   ;;  %v2244_v33 = vld [vmem:[%s3403_s0 + $0x38] sm:$0xff]  }
   0xb   :  { %539 = vmatpush1.bf16.msra.mxu1 %v2527_v10  ;;  %2025 = vmatpush3.bf16.msra.mxu0 %v2532_v11  ;;  %v2647_v31 = vld [vmem:[%s3404_s2 + $0x1c] ss:$12 sps:$4 sm:$0xff]   ;;  %v2663_v34 = vld [vmem:[%s3404_s2 + $0x18] ss:$12 sps:$4 sm:$0xff]   ;;  %v2683_v37 = vld [vmem:[%s3404_s2] ss:$12 sps:$4 sm:$0xff]  }
   0xc   :  { %540 = vmatprep.subr.bf16.mxu1 %v2539_v13  ;;  %213 = vmatprep.mubr.bf16.mxu0 %v3410_v1  ;;  %v2653_v32 = vld [vmem:[%s3404_s2 + $0x50] ss:$12 sps:$4 sm:$0xff]   ;;  %v2677_v36 = vld [vmem:[%s3404_s2 + $0x38] ss:$12 sps:$4 sm:$0xff]   ;;  %v2695_v38 = vld [vmem:[%s3404_s2 + $0x20] ss:$12 sps:$4 sm:$0xff]  }
   0xd   :  { %2012 = vmatprep.mubr.msk.bf16.mxu1 %vm146_vm0, %v2225_v14  ;;  %2026 = vmatprep.subr.bf16.mxu0 %v3412_v12  ;;  %v2669_v35 = vld [vmem:[%s3404_s2 + $0x4] ss:$12 sps:$4 sm:$0xff]   ;;  %v2704_v40 = vld [vmem:[%s3404_s2 + $0x8] ss:$12 sps:$4 sm:$0xff]   ;;  %v57_v44 = vld [vmem:[%s3405_s3] sm:$0x7] }
   0xe   :  { %v2754_v45 = vrot.slane %v57_v44, %v69_v43  ;;  %v2772_v58 = vrot.slane %v57_v44, %v61_v51  ;;  %v2774_v61 = vrot.slane %v57_v44, %v65_v54 }
   0xf   :  { %541 = vmatpush1.bf16.msra.mxu1 %v2551_v15  ;;  %2027 = vmatpush3.bf16.msra.mxu0 %v2565_v17 }
  0x10   :  { %542 = vmatprep.subr.bf16.mxu1 %v2558_v16  ;;  %2028 = vmatprep.subr.bf16.mxu0 %v3412_v12 }
  0x12   :  { %1832 = vmatmul.mubr.msk.bf16.gmra.mxu0 %vm146_vm0, %v2217_v8  ;;  %2013 = vmatmul.mubr.msk.bf16.gmra.mxu1 %vm146_vm0, %v2226_v18 }
  0x13   :  { %543 = vmatpush1.bf16.msra.mxu1 %v2573_v19  ;;  %223 = vmatprep.mubr.bf16.mxu0 %v3410_v1 }
  0x14   :  { %544 = vmatprep.subr.bf16.mxu1 %v2580_v20  ;;  %2016 = vmatprep.mubr.msk.bf16.mxu1 %vm146_vm0, %v2234_v21 }
  0x15   :  { %2029 = vmatpush3.bf16.msra.mxu0 %v2599_v23 }
  0x16   :  { %2030 = vmatprep.subr.bf16.mxu0 %v3412_v12 }
  0x17   :  { %545 = vmatpush1.bf16.msra.mxu1 %v2592_v22 }
  0x18   :  { %546 = vmatprep.subr.bf16.mxu1 %v2606_v24 }
  0x19   :  { %2031 = vmatpush3.bf16.msra.mxu0 %v2631_v29 }
  0x1a   :  { %1833 = vmatmul.mubr.msk.bf16.gmra.mxu0 %vm146_vm0, %v2225_v14  ;;  %2017 = vmatmul.mubr.msk.bf16.gmra.mxu1 %vm146_vm0, %v2235_v25 }
  0x1b   :  { %547 = vmatpush1.bf16.msra.mxu1 %v2617_v26  ;;  %233 = vmatprep.mubr.bf16.mxu0 %v3410_v1 }
  0x1c   :  { %548 = vmatprep.subr.bf16.mxu1 %v2622_v27  ;;  %2020 = vmatprep.mubr.msk.bf16.mxu1 %vm146_vm0, %v2243_v28 }
  0x1d   :  { %2032 = vmatprep.subr.bf16.mxu0 %v3412_v12 }
  0x1e   :  { %2033 = vmatpush3.bf16.msra.mxu0 %v2653_v32 }
  0x1f   :  { %549 = vmatpush1.bf16.msra.mxu1 %v2639_v30  ;;  %2034 = vmatprep.subr.bf16.mxu0 %v3412_v12 }
  0x20   :  { %550 = vmatprep.subr.bf16.mxu1 %v2647_v31 }
  0x22   :  { %1834 = vmatmul.mubr.msk.bf16.gmra.mxu0 %vm146_vm0, %v2226_v18  ;;  %2021 = vmatmul.mubr.msk.bf16.gmra.mxu1 %vm146_vm0, %v2244_v33 }
  0x23   :  { %551 = vmatpush1.bf16.msra.mxu1 %v2663_v34  ;;  %243 = vmatprep.mubr.bf16.mxu0 %v3410_v1 }
  0x24   :  { %552 = vmatprep.subr.bf16.mxu1 %v2669_v35  ;;  %570 = vmatprep.mubr.bf16.mxu1 %v3410_v1 }
  0x25   :  { %2035 = vmatpush3.bf16.msra.mxu0 %v2677_v36 }
  0x26   :  { %2036 = vmatprep.subr.bf16.mxu0 %v3412_v12 }
  0x27   :  { %553 = vmatpush1.bf16.msra.mxu1 %v2683_v37 }
  0x28   :  { %744 = vmatprep.subr.bf16.mxu1 %v2522_v9 }
  0x29   :  { %2037 = vmatpush3.bf16.msra.mxu0 %v2695_v38 }
  0x2a   :  { %1835 = vmatmul.mubr.msk.bf16.gmra.mxu0 %vm146_vm0, %v2234_v21  ;;  %571 = vmatmul.mubr.bf16.vlgmr.msra.gmra.mxu1 %v2451_v39 }
  0x2b   :  { %253 = vmatprep.mubr.bf16.mxu0 %v3410_v1  ;;  %2038 = vmatprep.subr.bf16.mxu0 %v3412_v12 }
  0x2c   :  { %745 = vmatpush1.bf16.msra.mxu1 %v2527_v10  ;;  %776 = vmatprep.mubr.bf16.mxu1 %v3410_v1 }
  0x2d   :  { %746 = vmatprep.subr.bf16.mxu1 %v2539_v13  ;;  %2039 = vmatpush3.bf16.msra.mxu0 %v2704_v40 }
  0x2e   :  { %2044 = vmatprep.subr.bf16.mxu0 %v3412_v12 }
  0x30   :  { %747 = vmatpush1.bf16.msra.mxu1 %v2551_v15 }
  0x31   :  { %748 = vmatprep.subr.bf16.mxu1 %v2558_v16 }
  0x32   :  { %1836 = vmatmul.mubr.msk.bf16.gmra.mxu0 %vm146_vm0, %v2235_v25 }
  0x33   :  { %263 = vmatprep.mubr.bf16.mxu0 %v3410_v1 }
  0x34   :  { %749 = vmatpush1.bf16.msra.mxu1 %v2573_v19 }
  0x35   :  { %750 = vmatprep.subr.bf16.mxu1 %v2580_v20 }
  0x38   :  { %751 = vmatpush1.bf16.msra.mxu1 %v2592_v22 }
  0x39   :  { %752 = vmatprep.subr.bf16.mxu1 %v2606_v24 }
  0x3a   :  { %1837 = vmatmul.mubr.msk.bf16.gmra.mxu0 %vm146_vm0, %v2243_v28 }
  0x3b   :  { %273 = vmatprep.mubr.bf16.mxu0 %v3410_v1 }
  0x3c   :  { %753 = vmatpush1.bf16.msra.mxu1 %v2617_v26 }
  0x3d   :  { %754 = vmatprep.subr.bf16.mxu1 %v2622_v27 }
  0x40   :  { %755 = vmatpush1.bf16.msra.mxu1 %v2639_v30 }
  0x41   :  { %756 = vmatprep.subr.bf16.mxu1 %v2647_v31 }
  0x42   :  { %1838 = vmatmul.mubr.msk.bf16.gmra.mxu0 %vm146_vm0, %v2244_v33 }
  0x43   :  { %2040 = vmatprep.mubr.msk.bf16.mxu0 %vm2452_vm1, %v3412_v12 }
  0x44   :  { %757 = vmatpush1.bf16.msra.mxu1 %v2663_v34 }
  0x45   :  { %758 = vmatprep.subr.bf16.mxu1 %v2669_v35 }
  0x48   :  { %759 = vmatpush1.bf16.msra.mxu1 %v2683_v37 }
  0x49   :  { %880 = vmatprep.subr.bf16.mxu1 %v2522_v9 }
  0x4a   :  { %2041 = vmatmul.mubr.bf16.vlgmr.msra.gmra.mxu0 %v2451_v39 }
  0x4b   :  { %2045 = vmatpush3.bf16.msra.mxu0 %v2532_v11  ;;  %2060 = vmatprep.mubr.msk.bf16.mxu0 %vm2452_vm1, %v3412_v12 }
  0x4c   :  { %2046 = vmatprep.subr.bf16.mxu0 %v3412_v12 }
  0x4f   :  { %2047 = vmatpush3.bf16.msra.mxu0 %v2565_v17 }
  0x50   :  { %2048 = vmatprep.subr.bf16.mxu0 %v3412_v12 }
  0x53   :  { %2049 = vmatpush3.bf16.msra.mxu0 %v2599_v23 }
  0x54   :  { %2050 = vmatprep.subr.bf16.mxu0 %v3412_v12 }
  0x57   :  { %2051 = vmatpush3.bf16.msra.mxu0 %v2631_v29 }
  0x58   :  { %2052 = vmatprep.subr.bf16.mxu0 %v3412_v12 }
  0x5b   :  { %2053 = vmatpush3.bf16.msra.mxu0 %v2653_v32 }
  0x5c   :  { %2054 = vmatprep.subr.bf16.mxu0 %v3412_v12 }
  0x5f   :  { %2055 = vmatpush3.bf16.msra.mxu0 %v2677_v36 }
  0x60   :  { %2056 = vmatprep.subr.bf16.mxu0 %v3412_v12 }
  0x63   :  { %2057 = vmatpush3.bf16.msra.mxu0 %v2695_v38 }
  0x64   :  { %2058 = vmatprep.subr.bf16.mxu0 %v3412_v12 }
  0x67   :  { %2059 = vmatpush3.bf16.msra.mxu0 %v2704_v40 }
  0x68   :  { %2064 = vmatprep.subr.bf16.mxu0 %v3412_v12 }
  0xca   :  { %v205_v46 = vpop.f32.mrf.mxu0  ;;  %v2010_v47 = vpop.f32.mrf.mxu1 }
  0xcb   :  { %v2757_v48 = vadd.f32 %v2010_v47, %v2754_v45 }
  0xcc   :  { %v2759_v49 = vpop.f32.mrf.mxu0  ;;  %v2761_v50 = vpop.f32.mrf.mxu1 }
  0xce   :  { %v2763_v52 = vpop.f32.mrf.mxu0  ;;  %v2011_v53 = vpop.f32.mrf.mxu1 }
  0xcf   :  { %v2766_v55 = vadd.f32 %v2011_v53, %v2754_v45 }
  0xd0   :  { %v2768_v56 = vpop.f32.mrf.mxu0  ;;  %v2770_v57 = vpop.f32.mrf.mxu1 }
  0xd2   :  { %v215_v59 = vpop.f32.mrf.mxu0  ;;  %v2014_v60 = vpop.f32.mrf.mxu1 }
  0xd3   :  { %v2777_v62 = vadd.f32 %v215_v59, %v2772_v58  ;;  %v2780_v63 = vadd.f32 %v2014_v60, %v2754_v45 }
  0xd4   :  { %v217_v0 = vpop.f32.mrf.mxu0  ;;  %v334_v2 = vpop.f32.mrf.mxu1 }
  0xd5   :  { %v2783_v3 = vadd.f32 %v217_v0, %v2774_v61  ;;  %v2786_v4 = vadd.f32 %v334_v2, %v2754_v45 }
  0xd6   :  { %v219_v5 = vpop.f32.mrf.mxu0  ;;  %v2015_v6 = vpop.f32.mrf.mxu1 }
  0xd7   :  { %v2789_v7 = vadd.f32 %v219_v5, %v2772_v58  ;;  %v2792_v8 = vadd.f32 %v2015_v6, %v2754_v45 }
  0xd8   :  { %v221_v14 = vpop.f32.mrf.mxu0  ;;  %v337_v18 = vpop.f32.mrf.mxu1 }
  0xd9   :  { %3414 = vst [vmem:[#allocation4_spill] sm:$0xff] %v2792_v8  ;;  %v2795_v21 = vadd.f32 %v221_v14, %v2774_v61  ;;  %v2798_v25 = vadd.f32 %v337_v18, %v2754_v45 }
  0xda   :  { %v225_v28 = vpop.f32.mrf.mxu0  ;;  %v2018_v33 = vpop.f32.mrf.mxu1 }
  0xdb   :  { %v2801_v39 = vadd.f32 %v225_v28, %v2772_v58  ;;  %v2804_v41 = vadd.f32 %v2018_v33, %v2754_v45 }
  0xdc   :  { %v227_v42 = vpop.f32.mrf.mxu0  ;;  %v350_v43 = vpop.f32.mrf.mxu1 }
  0xdd   :  { %3415 = vst [vmem:[#allocation5_spill] sm:$0xff] %v2804_v41  ;;  %v2807_v44 = vadd.f32 %v227_v42, %v2774_v61  ;;  %v2810_v47 = vadd.f32 %v350_v43, %v2754_v45 }
  0xde   :  { %v229_v51 = vpop.f32.mrf.mxu0  ;;  %v2019_v53 = vpop.f32.mrf.mxu1 }
  0xdf   :  { %3416 = vst [vmem:[#allocation6_spill] sm:$0xff] %v2810_v47  ;;  %v2813_v54 = vadd.f32 %v229_v51, %v2772_v58  ;;  %v2816_v59 = vadd.f32 %v2019_v53, %v2754_v45 }
  0xe0   :  { %v231_v60 = vpop.f32.mrf.mxu0  ;;  %v353_v0 = vpop.f32.mrf.mxu1 }
  0xe1   :  { %3417 = vst [vmem:[#allocation7_spill] sm:$0xff] %v2816_v59  ;;  %v2819_v2 = vadd.f32 %v231_v60, %v2774_v61  ;;  %v2822_v5 = vadd.f32 %v353_v0, %v2754_v45 }
  0xe2   :  { %v235_v6 = vpop.f32.mrf.mxu0  ;;  %v2022_v14 = vpop.f32.mrf.mxu1 }
  0xe3   :  { %3418 = vst [vmem:[#allocation8_spill] sm:$0xff] %v2822_v5  ;;  %v2825_v18 = vadd.f32 %v235_v6, %v2772_v58  ;;  %v2828_v28 = vadd.f32 %v2022_v14, %v2754_v45  ;;  %v206_v14 = vadd.f32 %v205_v46, %v2772_v58 }
  0xe4   :  { %v237_v33 = vpop.f32.mrf.mxu0  ;;  %v366_v42 = vpop.f32.mrf.mxu1 }
  0xe5   :  { %3419 = vst [vmem:[#allocation9_spill] sm:$0xff] %v2828_v28  ;;  %v2831_v43 = vadd.f32 %v237_v33, %v2774_v61  ;;  %v2834_v51 = vadd.f32 %v366_v42, %v2754_v45 }
  0xe6   :  { %v239_v53 = vpop.f32.mrf.mxu0  ;;  %v2023_v60 = vpop.f32.mrf.mxu1 }
  0xe7   :  { %3420 = vst [vmem:[#allocation10_spill] sm:$0xff] %v2834_v51  ;;  %v2837_v0 = vadd.f32 %v239_v53, %v2772_v58  ;;  %v2840_v1 = vadd.f32 %v2023_v60, %v2754_v45  ;;  %v210_v60 = vadd.f32 %v2763_v52, %v2772_v58 }
  0xe8   :  { %v241_v6 = vpop.f32.mrf.mxu0  ;;  %v369_v12 = vpop.f32.mrf.mxu1 }
  0xe9   :  { %3421 = vst [vmem:[#allocation11_spill] sm:$0xff] %v2840_v1  ;;  %v2844_v28 = vadd.f32 %v241_v6, %v2774_v61  ;;  %v2847_v33 = vadd.f32 %v369_v12, %v2754_v45 }
  0xea   :  { %v245_v42 = vpop.f32.mrf.mxu0  ;;  %v572_v51 = vpop.f32.mrf.mxu1 }
  0xeb   :  { %3422 = vst [vmem:[#allocation12_spill] sm:$0xff] %v2847_v33  ;;  %v2850_v59 = vadd.f32 %v245_v42, %v2772_v58  ;;  %v597_v53 = vadd.f32 %v572_v51, %v206_v14  ;;  %v208_v51 = vadd.f32 %v2759_v49, %v2774_v61 }
  0xec   :  { %v247_v41 = vpop.f32.mrf.mxu0  ;;  %v574_v5 = vpop.f32.mrf.mxu1 }
  0xed   :  { %v1863_v1 = vmul.f32 -1.442695, %v597_v53  ;;  %v2855_v46 = vadd.f32 %v247_v41, %v2774_v61  ;;  %v212_v41 = vadd.f32 %v2768_v56, %v2774_v61 }
  0xee   :  { %v249_v6 = vpop.f32.mrf.mxu0  ;;  %v576_v47 = vpop.f32.mrf.mxu1 }
  0xef   :  { %3423 = vst [vmem:[#allocation13_spill] sm:$0xff] %v2855_v46  ;;  %2264 = vpow2.f32 %v1863_v1  ;;  %v2858_v12 = vadd.f32 %v249_v6, %v2772_v58  ;;  %v598_v33 = vadd.f32 %v576_v47, %v210_v60  ;;  %v611_v46 = vadd.f32 %v574_v5, %v208_v51 }
  0xf0   :  { %v251_v8 = vpop.f32.mrf.mxu0  ;;  %v578_v52 = vpop.f32.mrf.mxu1 }
  0xf1   :  { %3424 = vst [vmem:[#allocation14_spill] sm:$0xff] %v2858_v12  ;;  %v1864_v14 = vmul.f32 -1.442695, %v598_v33  ;;  %v2863_v42 = vadd.f32 %v251_v8, %v2774_v61  ;;  %v612_v6 = vadd.f32 %v578_v52, %v212_v41  ;;  %v1865_v33 = vmul.f32 -1.442695, %v611_v46 }
  0xf2   :  { %v255_v53 = vpop.f32.mrf.mxu0 }
  0xf3   :  { %3425 = vst [vmem:[#allocation15_spill] sm:$0xff] %v2863_v42  ;;  %2266 = vpow2.f32 %v1864_v14  ;;  %v2868_v1 = vadd.f32 %v255_v53, %v2772_v58  ;;  %v1866_v42 = vmul.f32 -1.442695, %v612_v6 }
  0xf4   :  { %v257_v47 = vpop.f32.mrf.mxu0  ;;  %2268 = vpow2.f32 %v1865_v33 }
  0xf5   :  { %3426 = vst [vmem:[#allocation16_spill] sm:$0xff] %v2868_v1  ;;  %v2871_v60 = vadd.f32 %v257_v47, %v2774_v61  ;;  %2270 = vpow2.f32 %v1866_v42 }
  0xf6   :  { %v259_v49 = vpop.f32.mrf.mxu0 }
  0xf7   :  { %3427 = vst [vmem:[#allocation17_spill] sm:$0xff] %v2871_v60  ;;  %v2874_v8 = vadd.f32 %v259_v49, %v2772_v58 }
  0xf8   :  { %v261_v12 = vpop.f32.mrf.mxu0 }
  0xf9   :  { %3428 = vst [vmem:[#allocation18_spill] sm:$0xff] %v2874_v8  ;;  %v2877_v56 = vadd.f32 %v261_v12, %v2774_v61 }
  0xfa   :  { %v265_v5 = vpop.f32.mrf.mxu0 }
  0xfb   :  { %3429 = vst [vmem:[#allocation19_spill] sm:$0xff] %v2877_v56  ;;  %v2880_v51 = vadd.f32 %v265_v5, %v2772_v58 }
  0xfc   :  { %v2265_v14 = vpop.eup %2264  ;;  %v267_v52 = vpop.f32.mrf.mxu0 }
  0xfd   :  { %3430 = vst [vmem:[#allocation20_spill] sm:$0xff] %v2880_v51  ;;  %v605_v41 = vadd.f32 1.0, %v2265_v14  ;;  %v2883_v53 = vadd.f32 %v267_v52, %v2774_v61 }
  0xfe   :  { %v269_v46 = vpop.f32.mrf.mxu0 }
  0xff   :  { %3431 = vst [vmem:[#allocation21_spill] sm:$0xff] %v2883_v53  ;;  %2272 = vrcp.f32 %v605_v41  ;;  %v2886_v6 = vadd.f32 %v269_v46, %v2772_v58 }
 0x100   :  { %v2267_v47 = vpop.eup %2266  ;;  %v271_v12 = vpop.f32.mrf.mxu0 }
 0x101   :  { %3432 = vst [vmem:[#allocation22_spill] sm:$0xff] %v2886_v6  ;;  %v606_v49 = vadd.f32 1.0, %v2267_v47  ;;  %v2889_v33 = vadd.f32 %v271_v12, %v2774_v61  ;;  %v2269_v46 = vpop.eup %2268  ;;  %v2903_v47 = vld [vmem:[%s3406_s4] ss:$0 sm:$0xff] }
 0x102   :  { %v275_v5 = vpop.f32.mrf.mxu0  ;;  %v2271_v12 = vpop.eup %2270 }
 0x103   :  { %3433 = vst [vmem:[#allocation23_spill] sm:$0xff] %v2889_v33  ;;  %2274 = vrcp.f32 %v606_v49  ;;  %v2892_v42 = vadd.f32 %v275_v5, %v2772_v58  ;;  %v620_v33 = vadd.f32 1.0, %v2271_v12 }
 0x104   :  { %v277_v14 = vpop.f32.mrf.mxu0 }
 0x105   :  { %3434 = vst [vmem:[#allocation24_spill] sm:$0xff] %v2892_v42  ;;  %v2895_v52 = vadd.f32 %v277_v14, %v2774_v61  ;;  %v619_v42 = vadd.f32 1.0, %v2269_v46 }
 0x106   :  { %v279_v53 = vpop.f32.mrf.mxu0 }
 0x107   :  { %3435 = vst [vmem:[#allocation25_spill] sm:$0xff] %v2895_v52  ;;  %v2898_v41 = vadd.f32 %v279_v53, %v2772_v58  ;;  %v319_v58 = vadd.f32 %v2761_v50, %v2754_v45  ;;  %2276 = vrcp.f32 %v619_v42 }
 0x108   :  { %v281_v6 = vpop.f32.mrf.mxu0  ;;  %2278 = vrcp.f32 %v620_v33 }
 0x109   :  { %3436 = vst [vmem:[#allocation26_spill] sm:$0xff] %v2898_v41  ;;  %v2906_v49 = vadd.f32 %v281_v6, %v2774_v61  ;;  %v322_v6 = vadd.f32 %v2770_v57, %v2754_v45  ;;  %v3438_v57 = vmov 0.0  }
 0x10a   :  { %v713_v5 = vpop.f32.mrf.mxu0 }
 0x10b   :  { %3437 = vst [vmem:[#allocation27_spill] sm:$0xff] %v2906_v49  ;;  %v714_v14 = vadd.f32 %v2903_v47, %v713_v5 }
 0x10c   :  { %v2273_v52 = vpop.eup %2272  ;;  %v2042_v51 = vpop.f32.mrf.mxu0 }
 0x10d   :  { %v720_v53 = vmul.f32 %v2273_v52, %v714_v14 }
 0x10e   :  { %v716_v41 = vpop.f32.mrf.mxu0 }
 0x10f   :  { %v722_v56 = vadd.f32 %v720_v53, %v319_v58  ;;  %v717_v60 = vadd.f32 %v2903_v47, %v716_v41 }
 0x110   :  { %v2275_v8 = vpop.eup %2274  ;;  %v2043_v61 = vpop.f32.mrf.mxu0 }
 0x111   :  { %2280 = vtanh.f32 %v722_v56  ;;  %v721_v46 = vmul.f32 %v2275_v8, %v717_v60  ;;  %v3439_v60 = vmov 0  }
 0x113   :  { %v723_v5 = vadd.f32 %v721_v46, %v322_v6 }
 0x114   :  { %v2277_v51 = vpop.eup %2276 }
 0x115   :  { %2282 = vtanh.f32 %v723_v5  ;;  %v2279_v12 = vpop.eup %2278  ;;  %v726_v50 = vsub.f32 1.0, %v2277_v51  ;;  %v730_v53 = vmul.f32 0.0, %v2277_v51 }
 0x116   :  { %v727_v52 = vsub.f32 1.0, %v2279_v12  ;;  %v731_v41 = vmul.f32 0.0, %v2279_v12 }
 0x11e   :  { %v2281_v49 = vpop.eup %2280 }
 0x11f   :  { %v728_v14 = vmul.f32 %v2281_v49, %v726_v50 }
 0x121   :  { %v2914_v1 = vadd.f32 %v730_v53, %v728_v14 }
 0x122   :  { %v2283_v42 = vpop.eup %2282 }
 0x123   :  { %v729_v58 = vmul.f32 %v2283_v42, %v727_v52 }
 0x125   :  { %v2916_v33 = vadd.f32 %v731_v41, %v729_v58 }
 0x127   :  { %v743_v45 = vpack.c.bf16 %v2916_v33, %v2914_v1 }
 0x129   :  { %777 = vmatmul.mubr.bf16.vlgmr.msra.gmra.mxu1 %v743_v45  ;;  %2061 = vmatmul.mubr.bf16.vlgmr.msra.gmra.mxu0 %v743_v45 }
 0x12a   :  { %881 = vmatpush1.bf16.msra.mxu1 %v2527_v10  ;;  %2065 = vmatpush3.bf16.msra.mxu0 %v2532_v11 }
 0x12b   :  { %882 = vmatprep.subr.bf16.mxu1 %v2539_v13  ;;  %2066 = vmatprep.subr.bf16.mxu0 %v3438_v57 }
 0x12c   :  { %912 = vmatprep.mubr.bf16.mxu1 %v3439_v60  ;;  %2080 = vmatprep.mubr.msk.bf16.mxu0 %vm2452_vm1, %v3438_v57 }
 0x12e   :  { %883 = vmatpush1.bf16.msra.mxu1 %v2551_v15  ;;  %2067 = vmatpush3.bf16.msra.mxu0 %v2565_v17 }
 0x12f   :  { %884 = vmatprep.subr.bf16.mxu1 %v2558_v16  ;;  %2068 = vmatprep.subr.bf16.mxu0 %v3438_v57 }
 0x132   :  { %885 = vmatpush1.bf16.msra.mxu1 %v2573_v19  ;;  %2069 = vmatpush3.bf16.msra.mxu0 %v2599_v23 }
 0x133   :  { %886 = vmatprep.subr.bf16.mxu1 %v2580_v20  ;;  %2070 = vmatprep.subr.bf16.mxu0 %v3438_v57 }
 0x136   :  { %887 = vmatpush1.bf16.msra.mxu1 %v2592_v22  ;;  %2071 = vmatpush3.bf16.msra.mxu0 %v2631_v29 }
 0x137   :  { %888 = vmatprep.subr.bf16.mxu1 %v2606_v24  ;;  %2072 = vmatprep.subr.bf16.mxu0 %v3438_v57 }
 0x13a   :  { %889 = vmatpush1.bf16.msra.mxu1 %v2617_v26  ;;  %2073 = vmatpush3.bf16.msra.mxu0 %v2653_v32 }
 0x13b   :  { %890 = vmatprep.subr.bf16.mxu1 %v2622_v27  ;;  %2074 = vmatprep.subr.bf16.mxu0 %v3438_v57 }
 0x13e   :  { %891 = vmatpush1.bf16.msra.mxu1 %v2639_v30  ;;  %2075 = vmatpush3.bf16.msra.mxu0 %v2677_v36 }
 0x13f   :  { %892 = vmatprep.subr.bf16.mxu1 %v2647_v31  ;;  %2076 = vmatprep.subr.bf16.mxu0 %v3438_v57 }
 0x142   :  { %893 = vmatpush1.bf16.msra.mxu1 %v2663_v34  ;;  %2077 = vmatpush3.bf16.msra.mxu0 %v2695_v38 }
 0x143   :  { %894 = vmatprep.subr.bf16.mxu1 %v2669_v35  ;;  %2078 = vmatprep.subr.bf16.mxu0 %v3438_v57 }
 0x146   :  { %895 = vmatpush1.bf16.msra.mxu1 %v2683_v37  ;;  %2079 = vmatpush3.bf16.msra.mxu0 %v2704_v40 }
 0x147   :  { %1016 = vmatprep.subr.bf16.mxu1 %v2522_v9  ;;  %2084 = vmatprep.subr.bf16.mxu0 %v3438_v57 }
 0x1e9   :  { %v778_v8 = vpop.f32.mrf.mxu1  ;;  %v849_v56 = vpop.f32.mrf.mxu0 }
 0x1ea   :  { %v787_v49 = vadd.f32 %v778_v8, %v2777_v62 }
 0x1eb   :  { %v780_v61 = vpop.f32.mrf.mxu1  ;;  %v2062_v6 = vpop.f32.mrf.mxu0 }
 0x1ec   :  { %v1876_v46 = vmul.f32 -1.442695, %v787_v49  ;;  %v801_v52 = vadd.f32 %v780_v61, %v2783_v3  ;;  %v850_v3 = vadd.f32 %v2903_v47, %v849_v56 }
 0x1ed   :  { %v782_v5 = vpop.f32.mrf.mxu1  ;;  %v852_v51 = vpop.f32.mrf.mxu0 }
 0x1ee   :  { %2284 = vpow2.f32 %v1876_v46  ;;  %v788_v12 = vadd.f32 %v782_v5, %v2789_v7  ;;  %v1878_v53 = vmul.f32 -1.442695, %v801_v52 }
 0x1ef   :  { %v2063_v50 = vpop.f32.mrf.mxu0  ;;  %v784_v42 = vpop.f32.mrf.mxu1 }
 0x1f0   :  { %v1877_v14 = vmul.f32 -1.442695, %v788_v12  ;;  %v802_v58 = vadd.f32 %v784_v42, %v2795_v21  ;;  %v853_v50 = vadd.f32 %v2903_v47, %v852_v51 }
 0x1f2   :  { %2286 = vpow2.f32 %v1877_v14  ;;  %v1879_v41 = vmul.f32 -1.442695, %v802_v58 }
 0x1f3   :  { %2288 = vpow2.f32 %v1878_v53 }
 0x1f4   :  { %2290 = vpow2.f32 %v1879_v41 }
 0x1fb   :  { %v2285_v62 = vpop.eup %2284 }
 0x1fc   :  { %v795_v45 = vadd.f32 1.0, %v2285_v62 }
 0x1fe   :  { %2292 = vrcp.f32 %v795_v45 }
 0x1ff   :  { %v2287_v8 = vpop.eup %2286 }
 0x200   :  { %v796_v49 = vadd.f32 1.0, %v2287_v8  ;;  %v2289_v6 = vpop.eup %2288 }
 0x201   :  { %v2291_v7 = vpop.eup %2290  ;;  %v809_v46 = vadd.f32 1.0, %v2289_v6 }
 0x202   :  { %2294 = vrcp.f32 %v796_v49  ;;  %v810_v5 = vadd.f32 1.0, %v2291_v7 }
 0x203   :  { %2296 = vrcp.f32 %v809_v46 }
 0x204   :  { %2298 = vrcp.f32 %v810_v5 }
 0x20b   :  { %v2293_v61 = vpop.eup %2292 }
 0x20c   :  { %v856_v12 = vmul.f32 %v2293_v61, %v850_v3 }
 0x20e   :  { %v858_v21 = vadd.f32 %v856_v12, %v2757_v48 }
 0x20f   :  { %v2295_v52 = vpop.eup %2294 }
 0x210   :  { %2300 = vtanh.f32 %v858_v21  ;;  %v857_v14 = vmul.f32 %v2295_v52, %v853_v50  ;;  %v2297_v58 = vpop.eup %2296 }
 0x211   :  { %v2299_v53 = vpop.eup %2298  ;;  %v862_v41 = vsub.f32 1.0, %v2297_v58  ;;  %v866_v45 = vmul.f32 %v2297_v58, %v2914_v1 }
 0x212   :  { %v859_v42 = vadd.f32 %v857_v14, %v2766_v55  ;;  %v863_v8 = vsub.f32 1.0, %v2299_v53  ;;  %v867_v51 = vmul.f32 %v2299_v53, %v2916_v33 }
 0x214   :  { %2302 = vtanh.f32 %v859_v42 }
 0x21d   :  { %v2301_v62 = vpop.eup %2300 }
 0x21e   :  { %v864_v56 = vmul.f32 %v2301_v62, %v862_v41 }
 0x220   :  { %v2964_v49 = vadd.f32 %v866_v45, %v864_v56 }
 0x221   :  { %v2303_v48 = vpop.eup %2302 }
 0x222   :  { %v865_v6 = vmul.f32 %v2303_v48, %v863_v8 }
 0x224   :  { %v2967_v7 = vadd.f32 %v867_v51, %v865_v6 }
 0x226   :  { %v879_v55 = vpack.c.bf16 %v2967_v7, %v2964_v49 }
 0x228   :  { %913 = vmatmul.mubr.bf16.vlgmr.msra.gmra.mxu1 %v879_v55  ;;  %2081 = vmatmul.mubr.bf16.vlgmr.msra.gmra.mxu0 %v879_v55 }
 0x229   :  { %1017 = vmatpush1.bf16.msra.mxu1 %v2527_v10  ;;  %2085 = vmatpush3.bf16.msra.mxu0 %v2532_v11 }
 0x22a   :  { %1018 = vmatprep.subr.bf16.mxu1 %v2539_v13  ;;  %2086 = vmatprep.subr.bf16.mxu0 %v3438_v57 }
 0x22b   :  { %1048 = vmatprep.mubr.bf16.mxu1 %v3439_v60  ;;  %2100 = vmatprep.mubr.msk.bf16.mxu0 %vm2452_vm1, %v3438_v57 }
 0x22d   :  { %1019 = vmatpush1.bf16.msra.mxu1 %v2551_v15  ;;  %2087 = vmatpush3.bf16.msra.mxu0 %v2565_v17 }
 0x22e   :  { %1020 = vmatprep.subr.bf16.mxu1 %v2558_v16  ;;  %2088 = vmatprep.subr.bf16.mxu0 %v3438_v57 }
 0x231   :  { %1021 = vmatpush1.bf16.msra.mxu1 %v2573_v19  ;;  %2089 = vmatpush3.bf16.msra.mxu0 %v2599_v23 }
 0x232   :  { %1022 = vmatprep.subr.bf16.mxu1 %v2580_v20  ;;  %2090 = vmatprep.subr.bf16.mxu0 %v3438_v57 }
 0x235   :  { %1023 = vmatpush1.bf16.msra.mxu1 %v2592_v22  ;;  %2091 = vmatpush3.bf16.msra.mxu0 %v2631_v29 }
 0x236   :  { %1024 = vmatprep.subr.bf16.mxu1 %v2606_v24  ;;  %2092 = vmatprep.subr.bf16.mxu0 %v3438_v57 }
 0x239   :  { %1025 = vmatpush1.bf16.msra.mxu1 %v2617_v26  ;;  %2093 = vmatpush3.bf16.msra.mxu0 %v2653_v32 }
 0x23a   :  { %1026 = vmatprep.subr.bf16.mxu1 %v2622_v27  ;;  %2094 = vmatprep.subr.bf16.mxu0 %v3438_v57 }
 0x23d   :  { %1027 = vmatpush1.bf16.msra.mxu1 %v2639_v30  ;;  %2095 = vmatpush3.bf16.msra.mxu0 %v2677_v36 }
 0x23e   :  { %1028 = vmatprep.subr.bf16.mxu1 %v2647_v31  ;;  %2096 = vmatprep.subr.bf16.mxu0 %v3438_v57 }
 0x241   :  { %1029 = vmatpush1.bf16.msra.mxu1 %v2663_v34  ;;  %2097 = vmatpush3.bf16.msra.mxu0 %v2695_v38 }
 0x242   :  { %1030 = vmatprep.subr.bf16.mxu1 %v2669_v35  ;;  %2098 = vmatprep.subr.bf16.mxu0 %v3438_v57 }
 0x245   :  { %1031 = vmatpush1.bf16.msra.mxu1 %v2683_v37  ;;  %2099 = vmatpush3.bf16.msra.mxu0 %v2704_v40 }
 0x246   :  { %1152 = vmatprep.subr.bf16.mxu1 %v2522_v9  ;;  %2104 = vmatprep.subr.bf16.mxu0 %v3438_v57 }
 0x2e8   :  { %v914_v10 = vpop.f32.mrf.mxu1  ;;  %v985_v11 = vpop.f32.mrf.mxu0 }
 0x2e9   :  { %v923_v1 = vadd.f32 %v914_v10, %v2801_v39 }
 0x2ea   :  { %v916_v33 = vpop.f32.mrf.mxu1  ;;  %v2082_v46 = vpop.f32.mrf.mxu0 }
 0x2eb   :  { %v1880_v3 = vmul.f32 -1.442695, %v923_v1  ;;  %v937_v50 = vadd.f32 %v916_v33, %v2807_v44  ;;  %v986_v44 = vadd.f32 %v2903_v47, %v985_v11 }
 0x2ec   :  { %v918_v61 = vpop.f32.mrf.mxu1  ;;  %v988_v5 = vpop.f32.mrf.mxu0 }
 0x2ed   :  { %2304 = vpow2.f32 %v1880_v3  ;;  %v924_v12 = vadd.f32 %v918_v61, %v2813_v54  ;;  %v1882_v42 = vmul.f32 -1.442695, %v937_v50  ;;  %v989_v51 = vadd.f32 %v2903_v47, %v988_v5 }
 0x2ee   :  { %v2083_v21 = vpop.f32.mrf.mxu0  ;;  %v920_v14 = vpop.f32.mrf.mxu1 }
 0x2ef   :  { %v1881_v52 = vmul.f32 -1.442695, %v924_v12  ;;  %v938_v9 = vadd.f32 %v920_v14, %v2819_v2 }
 0x2f1   :  { %2306 = vpow2.f32 %v1881_v52  ;;  %v1883_v58 = vmul.f32 -1.442695, %v938_v9  ;;  %v3025_v9 = vld [vmem:[%s3404_s2 + $0xa8] ss:$12 sps:$4 sm:$0xff]  }
 0x2f2   :  { %2308 = vpow2.f32 %v1882_v42 }
 0x2f3   :  { %2310 = vpow2.f32 %v1883_v58 }
 0x2fa   :  { %v2305_v39 = vpop.eup %2304 }
 0x2fb   :  { %v931_v53 = vadd.f32 1.0, %v2305_v39 }
 0x2fd   :  { %2312 = vrcp.f32 %v931_v53 }
 0x2fe   :  { %v2307_v41 = vpop.eup %2306 }
 0x2ff   :  { %v932_v62 = vadd.f32 1.0, %v2307_v41  ;;  %v2309_v56 = vpop.eup %2308 }
 0x300   :  { %v2311_v54 = vpop.eup %2310  ;;  %v945_v45 = vadd.f32 1.0, %v2309_v56  ;;  %v3440_v56 = vld [vmem:[#allocation4_spill] sm:$0xff] }
 0x301   :  { %2314 = vrcp.f32 %v932_v62  ;;  %v946_v48 = vadd.f32 1.0, %v2311_v54 }
 0x302   :  { %2316 = vrcp.f32 %v945_v45 }
 0x303   :  { %2318 = vrcp.f32 %v946_v48 }
 0x30a   :  { %v2313_v8 = vpop.eup %2312 }
 0x30b   :  { %v992_v6 = vmul.f32 %v2313_v8, %v986_v44 }
 0x30d   :  { %v994_v2 = vadd.f32 %v992_v6, %v2786_v4 }
 0x30e   :  { %v2315_v55 = vpop.eup %2314 }
 0x30f   :  { %2320 = vtanh.f32 %v994_v2  ;;  %v993_v10 = vmul.f32 %v2315_v55, %v989_v51  ;;  %v2317_v33 = vpop.eup %2316 }
 0x310   :  { %v2319_v46 = vpop.eup %2318  ;;  %v998_v3 = vsub.f32 1.0, %v2317_v33  ;;  %v1002_v12 = vmul.f32 %v2317_v33, %v2964_v49  ;;  %v3031_v49 = vld [vmem:[%s3404_s2 + $0xb0] ss:$12 sps:$4 sm:$0xff]  }
 0x311   :  { %v995_v1 = vadd.f32 %v993_v10, %v2798_v25  ;;  %v999_v21 = vsub.f32 1.0, %v2319_v46  ;;  %v1003_v5 = vmul.f32 %v2319_v46, %v2967_v7 }
 0x313   :  { %2322 = vtanh.f32 %v995_v1 }
 0x31c   :  { %v2321_v61 = vpop.eup %2320 }
 0x31d   :  { %v1000_v11 = vmul.f32 %v2321_v61, %v998_v3  ;;  %v3093_v3 = vld [vmem:[%s3404_s2 + $0x94] ss:$12 sps:$4 sm:$0xff]   ;;  %v3103_v61 = vld [vmem:[%s3404_s2 + $0x90] ss:$12 sps:$4 sm:$0xff]  }
 0x31f   :  { %v3015_v50 = vadd.f32 %v1002_v12, %v1000_v11  ;;  %v3109_v11 = vld [vmem:[%s3404_s2 + $0x98] ss:$12 sps:$4 sm:$0xff]   ;;  %v3115_v12 = vld [vmem:[%s3404_s2 + $0x7c] ss:$12 sps:$4 sm:$0xff]  }
 0x320   :  { %v2323_v4 = vpop.eup %2322 }
 0x321   :  { %v1001_v52 = vmul.f32 %v2323_v4, %v999_v21  ;;  %v3122_v21 = vld [vmem:[%s3404_s2 + $0x78] ss:$12 sps:$4 sm:$0xff]  }
 0x322   :  { %v3134_v4 = vld [vmem:[%s3404_s2 + $0x64] ss:$12 sps:$4 sm:$0xff]  }
 0x323   :  { %v3018_v14 = vadd.f32 %v1003_v5, %v1001_v52  ;;  %v3141_v52 = vld [vmem:[%s3404_s2 + $0x60] ss:$12 sps:$4 sm:$0xff]   ;;  %v3147_v5 = vld [vmem:[%s3404_s2 + $0x68] ss:$12 sps:$4 sm:$0xff]  }
 0x325   :  { %v1015_v25 = vpack.c.bf16 %v3018_v14, %v3015_v50 }
 0x327   :  { %1049 = vmatmul.mubr.bf16.vlgmr.msra.gmra.mxu1 %v1015_v25  ;;  %2101 = vmatmul.mubr.bf16.vlgmr.msra.gmra.mxu0 %v1015_v25  ;;  %v3160_v25 = vld [vmem:[%s3404_s2 + $0x48] ss:$12 sps:$4 sm:$0xff]  }
 0x328   :  { %1153 = vmatpush1.bf16.msra.mxu1 %v3025_v9  ;;  %2105 = vmatpush3.bf16.msra.mxu0 %v3031_v49 }
 0x329   :  { %1154 = vmatprep.subr.bf16.mxu1 %v2539_v13  ;;  %2106 = vmatprep.subr.bf16.mxu0 %v3438_v57  ;;  %v3068_v13 = vld [vmem:[%s3404_s2 + $0xac] ss:$12 sps:$4 sm:$0xff]  }
 0x32a   :  { %1184 = vmatprep.mubr.bf16.mxu1 %v3439_v60  ;;  %2120 = vmatprep.mubr.msk.bf16.mxu0 %vm2452_vm1, %v3438_v57 }
 0x32c   :  { %1155 = vmatpush1.bf16.msra.mxu1 %v2551_v15  ;;  %2107 = vmatpush3.bf16.msra.mxu0 %v2565_v17 }
 0x32d   :  { %1156 = vmatprep.subr.bf16.mxu1 %v2558_v16  ;;  %2108 = vmatprep.subr.bf16.mxu0 %v3438_v57 }
 0x330   :  { %1157 = vmatpush1.bf16.msra.mxu1 %v2573_v19  ;;  %2109 = vmatpush3.bf16.msra.mxu0 %v2599_v23 }
 0x331   :  { %1158 = vmatprep.subr.bf16.mxu1 %v2580_v20  ;;  %2110 = vmatprep.subr.bf16.mxu0 %v3438_v57 }
 0x334   :  { %1159 = vmatpush1.bf16.msra.mxu1 %v2592_v22  ;;  %2111 = vmatpush3.bf16.msra.mxu0 %v2631_v29 }
 0x335   :  { %1160 = vmatprep.subr.bf16.mxu1 %v2606_v24  ;;  %2112 = vmatprep.subr.bf16.mxu0 %v3438_v57 }
 0x338   :  { %1161 = vmatpush1.bf16.msra.mxu1 %v2617_v26  ;;  %2113 = vmatpush3.bf16.msra.mxu0 %v2653_v32 }
 0x339   :  { %1162 = vmatprep.subr.bf16.mxu1 %v2622_v27  ;;  %2114 = vmatprep.subr.bf16.mxu0 %v3438_v57 }
 0x33c   :  { %1163 = vmatpush1.bf16.msra.mxu1 %v2639_v30  ;;  %2115 = vmatpush3.bf16.msra.mxu0 %v2677_v36 }
 0x33d   :  { %1164 = vmatprep.subr.bf16.mxu1 %v2647_v31  ;;  %2116 = vmatprep.subr.bf16.mxu0 %v3438_v57 }
 0x340   :  { %1165 = vmatpush1.bf16.msra.mxu1 %v2663_v34  ;;  %2117 = vmatpush3.bf16.msra.mxu0 %v2695_v38 }
 0x341   :  { %1166 = vmatprep.subr.bf16.mxu1 %v2669_v35  ;;  %2118 = vmatprep.subr.bf16.mxu0 %v3438_v57 }
 0x344   :  { %1167 = vmatpush1.bf16.msra.mxu1 %v2683_v37  ;;  %2119 = vmatpush3.bf16.msra.mxu0 %v2704_v40 }
 0x345   :  { %1288 = vmatprep.subr.bf16.mxu1 %v3068_v13  ;;  %2124 = vmatprep.subr.bf16.mxu0 %v3438_v57 }
 0x3e7   :  { %v1050_v15 = vpop.f32.mrf.mxu1  ;;  %v1121_v16 = vpop.f32.mrf.mxu0 }
 0x3e8   :  { %v1059_v17 = vadd.f32 %v1050_v15, %v2825_v18  ;;  %v3166_v15 = vld [vmem:[%s3404_s2 + $0x50] ss:$12 sps:$4 sm:$0xff]  }
 0x3e9   :  { %v1052_v19 = vpop.f32.mrf.mxu1  ;;  %v2102_v20 = vpop.f32.mrf.mxu0 }
 0x3ea   :  { %v1884_v22 = vmul.f32 -1.442695, %v1059_v17  ;;  %v1073_v29 = vadd.f32 %v1052_v19, %v2831_v43  ;;  %v1122_v43 = vadd.f32 %v2903_v47, %v1121_v16  ;;  %v3172_v16 = vld [vmem:[%s3404_s2 + $0x34] ss:$12 sps:$4 sm:$0xff]   ;;  %v3179_v17 = vld [vmem:[%s3404_s2 + $0x30] ss:$12 sps:$4 sm:$0xff]  }
 0x3eb   :  { %v1054_v23 = vpop.f32.mrf.mxu1  ;;  %v1124_v24 = vpop.f32.mrf.mxu0  ;;  %v3185_v19 = vld [vmem:[%s3404_s2 + $0x38] ss:$12 sps:$4 sm:$0xff]   ;;  %v3191_v20 = vld [vmem:[%s3404_s2 + $0x1c] ss:$12 sps:$4 sm:$0xff]  }
 0x3ec   :  { %2324 = vpow2.f32 %v1884_v22  ;;  %v1060_v26 = vadd.f32 %v1054_v23, %v2837_v0  ;;  %v1886_v34 = vmul.f32 -1.442695, %v1073_v29  ;;  %v1125_v53 = vadd.f32 %v2903_v47, %v1124_v24  ;;  %v3198_v22 = vld [vmem:[%s3404_s2 + $0x18] ss:$12 sps:$4 sm:$0xff]   ;;  %v3204_v23 = vld [vmem:[%s3404_s2 + $0x20] ss:$12 sps:$4 sm:$0xff]  }
 0x3ed   :  { %v2103_v27 = vpop.f32.mrf.mxu0  ;;  %v1056_v31 = vpop.f32.mrf.mxu1  ;;  %v3210_v24 = vld [vmem:[%s3404_s2 + $0x4] ss:$12 sps:$4 sm:$0xff]  }
 0x3ee   :  { %v1885_v30 = vmul.f32 -1.442695, %v1060_v26  ;;  %v1074_v32 = vadd.f32 %v1056_v31, %v2844_v28  ;;  %v3217_v26 = vld [vmem:[%s3404_s2] ss:$12 sps:$4 sm:$0xff]   ;;  %v3223_v27 = vld [vmem:[%s3404_s2 + $0x8] ss:$12 sps:$4 sm:$0xff]  }
 0x3f0   :  { %2326 = vpow2.f32 %v1885_v30  ;;  %v1887_v35 = vmul.f32 -1.442695, %v1074_v32 }
 0x3f1   :  { %2328 = vpow2.f32 %v1886_v34 }
 0x3f2   :  { %2330 = vpow2.f32 %v1887_v35 }
 0x3f9   :  { %v2325_v36 = vpop.eup %2324 }
 0x3fa   :  { %v1067_v37 = vadd.f32 1.0, %v2325_v36 }
 0x3fc   :  { %2332 = vrcp.f32 %v1067_v37 }
 0x3fd   :  { %v2327_v38 = vpop.eup %2326 }
 0x3fe   :  { %v1068_v40 = vadd.f32 1.0, %v2327_v38  ;;  %v2329_v18 = vpop.eup %2328  ;;  %v3441_v38 = vld [vmem:[#allocation14_spill] sm:$0xff] }
 0x3ff   :  { %v2331_v0 = vpop.eup %2330  ;;  %v1081_v7 = vadd.f32 1.0, %v2329_v18 }
 0x400   :  { %2334 = vrcp.f32 %v1068_v40  ;;  %v1082_v58 = vadd.f32 1.0, %v2331_v0  ;;  %v3442_v0 = vld [vmem:[#allocation13_spill] sm:$0xff] }
 0x401   :  { %2336 = vrcp.f32 %v1081_v7 }
 0x402   :  { %2338 = vrcp.f32 %v1082_v58  ;;  %v3443_v58 = vld [vmem:[#allocation15_spill] sm:$0xff] }
 0x409   :  { %v2333_v42 = vpop.eup %2332 }
 0x40a   :  { %v1128_v39 = vmul.f32 %v2333_v42, %v1122_v43 }
 0x40c   :  { %v1130_v28 = vadd.f32 %v1128_v39, %v2780_v63 }
 0x40d   :  { %v2335_v41 = vpop.eup %2334 }
 0x40e   :  { %2340 = vtanh.f32 %v1130_v28  ;;  %v1129_v62 = vmul.f32 %v2335_v41, %v1125_v53  ;;  %v2337_v45 = vpop.eup %2336 }
 0x40f   :  { %v2339_v44 = vpop.eup %2338  ;;  %v1134_v8 = vsub.f32 1.0, %v2337_v45  ;;  %v1138_v2 = vmul.f32 %v2337_v45, %v3015_v50  ;;  %v3128_v50 = vld [vmem:[%s3404_s2 + $0x80] ss:$12 sps:$4 sm:$0xff]  }
 0x410   :  { %v1131_v54 = vadd.f32 %v1129_v62, %v3440_v56  ;;  %v1135_v51 = vsub.f32 1.0, %v2339_v44  ;;  %v1139_v1 = vmul.f32 %v2339_v44, %v3018_v14  ;;  %v3153_v14 = vld [vmem:[%s3404_s2 + $0x4c] ss:$12 sps:$4 sm:$0xff]  }
 0x412   :  { %2342 = vtanh.f32 %v1131_v54 }
 0x41b   :  { %v2341_v48 = vpop.eup %2340 }
 0x41c   :  { %v1136_v6 = vmul.f32 %v2341_v48, %v1134_v8 }
 0x41e   :  { %v3081_v55 = vadd.f32 %v1138_v2, %v1136_v6 }
 0x41f   :  { %v2343_v63 = vpop.eup %2342 }
 0x420   :  { %v1137_v10 = vmul.f32 %v2343_v63, %v1135_v51  ;;  %v3444_v51 = vld [vmem:[#allocation6_spill] sm:$0xff] }
 0x422   :  { %v3084_v33 = vadd.f32 %v1139_v1, %v1137_v10 }
 0x424   :  { %v1151_v46 = vpack.c.bf16 %v3084_v33, %v3081_v55 }
 0x426   :  { %1185 = vmatmul.mubr.bf16.vlgmr.msra.gmra.mxu1 %v1151_v46  ;;  %2121 = vmatmul.mubr.bf16.vlgmr.msra.gmra.mxu0 %v1151_v46 }
 0x427   :  { %1289 = vmatpush1.bf16.msra.mxu1 %v3025_v9  ;;  %2125 = vmatpush3.bf16.msra.mxu0 %v3031_v49 }
 0x428   :  { %1290 = vmatprep.subr.bf16.mxu1 %v3093_v3  ;;  %2126 = vmatprep.subr.bf16.mxu0 %v3438_v57 }
 0x429   :  { %1320 = vmatprep.mubr.bf16.mxu1 %v3439_v60  ;;  %2140 = vmatprep.mubr.msk.bf16.mxu0 %vm2452_vm1, %v3438_v57 }
 0x42b   :  { %1291 = vmatpush1.bf16.msra.mxu1 %v3103_v61  ;;  %2127 = vmatpush3.bf16.msra.mxu0 %v3109_v11 }
 0x42c   :  { %1292 = vmatprep.subr.bf16.mxu1 %v3115_v12  ;;  %2128 = vmatprep.subr.bf16.mxu0 %v3438_v57 }
 0x42f   :  { %1293 = vmatpush1.bf16.msra.mxu1 %v3122_v21  ;;  %2129 = vmatpush3.bf16.msra.mxu0 %v3128_v50 }
 0x430   :  { %1294 = vmatprep.subr.bf16.mxu1 %v3134_v4  ;;  %2130 = vmatprep.subr.bf16.mxu0 %v3438_v57 }
 0x433   :  { %1295 = vmatpush1.bf16.msra.mxu1 %v3141_v52  ;;  %2131 = vmatpush3.bf16.msra.mxu0 %v3147_v5 }
 0x434   :  { %1296 = vmatprep.subr.bf16.mxu1 %v3153_v14  ;;  %2132 = vmatprep.subr.bf16.mxu0 %v3438_v57 }
 0x437   :  { %1297 = vmatpush1.bf16.msra.mxu1 %v3160_v25  ;;  %2133 = vmatpush3.bf16.msra.mxu0 %v3166_v15 }
 0x438   :  { %1298 = vmatprep.subr.bf16.mxu1 %v3172_v16  ;;  %2134 = vmatprep.subr.bf16.mxu0 %v3438_v57 }
 0x43b   :  { %1299 = vmatpush1.bf16.msra.mxu1 %v3179_v17  ;;  %2135 = vmatpush3.bf16.msra.mxu0 %v3185_v19 }
 0x43c   :  { %1300 = vmatprep.subr.bf16.mxu1 %v3191_v20  ;;  %2136 = vmatprep.subr.bf16.mxu0 %v3438_v57 }
 0x43f   :  { %1301 = vmatpush1.bf16.msra.mxu1 %v3198_v22  ;;  %2137 = vmatpush3.bf16.msra.mxu0 %v3204_v23 }
 0x440   :  { %1302 = vmatprep.subr.bf16.mxu1 %v3210_v24  ;;  %2138 = vmatprep.subr.bf16.mxu0 %v3438_v57 }
 0x443   :  { %1303 = vmatpush1.bf16.msra.mxu1 %v3217_v26  ;;  %2139 = vmatpush3.bf16.msra.mxu0 %v3223_v27 }
 0x444   :  { %1424 = vmatprep.subr.bf16.mxu1 %v3068_v13  ;;  %2144 = vmatprep.subr.bf16.mxu0 %v3438_v57 }
 0x4e6   :  { %v1186_v29 = vpop.f32.mrf.mxu1  ;;  %v1257_v30 = vpop.f32.mrf.mxu0 }
 0x4e7   :  { %v1195_v31 = vadd.f32 %v1186_v29, %v2850_v59  ;;  %v1258_v8 = vadd.f32 %v2903_v47, %v1257_v30  ;;  %v3445_v29 = vld [vmem:[#allocation8_spill] sm:$0xff] }
 0x4e8   :  { %v1188_v32 = vpop.f32.mrf.mxu1  ;;  %v2122_v34 = vpop.f32.mrf.mxu0 }
 0x4e9   :  { %v1888_v35 = vmul.f32 -1.442695, %v1195_v31  ;;  %v1209_v7 = vadd.f32 %v1188_v32, %v3442_v0 }
 0x4ea   :  { %v1190_v36 = vpop.f32.mrf.mxu1  ;;  %v1260_v37 = vpop.f32.mrf.mxu0 }
 0x4eb   :  { %2344 = vpow2.f32 %v1888_v35  ;;  %v1196_v40 = vadd.f32 %v1190_v36, %v3441_v38  ;;  %v1890_v28 = vmul.f32 -1.442695, %v1209_v7  ;;  %v1261_v10 = vadd.f32 %v2903_v47, %v1260_v37 }
 0x4ec   :  { %v2123_v18 = vpop.f32.mrf.mxu0  ;;  %v1192_v42 = vpop.f32.mrf.mxu1 }
 0x4ed   :  { %v1889_v43 = vmul.f32 -1.442695, %v1196_v40  ;;  %v1210_v39 = vadd.f32 %v1192_v42, %v3443_v58  ;;  %v3446_v58 = vld [vmem:[#allocation16_spill] sm:$0xff] }
 0x4ef   :  { %2346 = vpow2.f32 %v1889_v43  ;;  %v1891_v53 = vmul.f32 -1.442695, %v1210_v39 }
 0x4f0   :  { %2348 = vpow2.f32 %v1890_v28 }
 0x4f1   :  { %2350 = vpow2.f32 %v1891_v53 }
 0x4f8   :  { %v2345_v59 = vpop.eup %2344 }
 0x4f9   :  { %v1203_v41 = vadd.f32 1.0, %v2345_v59 }
 0x4fb   :  { %2352 = vrcp.f32 %v1203_v41 }
 0x4fc   :  { %v2347_v62 = vpop.eup %2346 }
 0x4fd   :  { %v1204_v56 = vadd.f32 1.0, %v2347_v62  ;;  %v2349_v54 = vpop.eup %2348 }
 0x4fe   :  { %v2351_v45 = vpop.eup %2350  ;;  %v1217_v44 = vadd.f32 1.0, %v2349_v54 }
 0x4ff   :  { %2354 = vrcp.f32 %v1204_v56  ;;  %v1218_v6 = vadd.f32 1.0, %v2351_v45  ;;  %v3447_v56 = vld [vmem:[#allocation18_spill] sm:$0xff] }
 0x500   :  { %2356 = vrcp.f32 %v1217_v44  ;;  %v3448_v44 = vld [vmem:[#allocation17_spill] sm:$0xff] }
 0x501   :  { %2358 = vrcp.f32 %v1218_v6 }
 0x508   :  { %v2353_v48 = vpop.eup %2352 }
 0x509   :  { %v1264_v2 = vmul.f32 %v2353_v48, %v1258_v8 }
 0x50b   :  { %v1266_v63 = vadd.f32 %v1264_v2, %v3444_v51 }
 0x50c   :  { %v2355_v1 = vpop.eup %2354 }
 0x50d   :  { %2360 = vtanh.f32 %v1266_v63  ;;  %v1265_v46 = vmul.f32 %v2355_v1, %v1261_v10  ;;  %v2357_v32 = vpop.eup %2356 }
 0x50e   :  { %v2359_v34 = vpop.eup %2358  ;;  %v1270_v35 = vsub.f32 1.0, %v2357_v32  ;;  %v1274_v38 = vmul.f32 %v2357_v32, %v3081_v55 }
 0x50f   :  { %v1267_v31 = vadd.f32 %v1265_v46, %v3445_v29  ;;  %v1271_v40 = vsub.f32 1.0, %v2359_v34  ;;  %v1275_v37 = vmul.f32 %v2359_v34, %v3084_v33 }
 0x511   :  { %2362 = vtanh.f32 %v1267_v31 }
 0x51a   :  { %v2361_v36 = vpop.eup %2360 }
 0x51b   :  { %v1272_v30 = vmul.f32 %v2361_v36, %v1270_v35 }
 0x51d   :  { %v3237_v18 = vadd.f32 %v1274_v38, %v1272_v30 }
 0x51e   :  { %v2363_v0 = vpop.eup %2362 }
 0x51f   :  { %v1273_v7 = vmul.f32 %v2363_v0, %v1271_v40  ;;  %v3450_v40 = vld [vmem:[#allocation5_spill] sm:$0xff] }
 0x521   :  { %v3240_v43 = vadd.f32 %v1275_v37, %v1273_v7 }
 0x523   :  { %v1287_v42 = vpack.c.bf16 %v3240_v43, %v3237_v18 }
 0x525   :  { %1321 = vmatmul.mubr.bf16.vlgmr.msra.gmra.mxu1 %v1287_v42  ;;  %2141 = vmatmul.mubr.bf16.vlgmr.msra.gmra.mxu0 %v1287_v42 }
 0x526   :  { %1425 = vmatpush1.bf16.msra.mxu1 %v3025_v9  ;;  %2145 = vmatpush3.bf16.msra.mxu0 %v3031_v49 }
 0x527   :  { %1426 = vmatprep.subr.bf16.mxu1 %v3093_v3  ;;  %2146 = vmatprep.subr.bf16.mxu0 %v3438_v57 }
 0x528   :  { %1456 = vmatprep.mubr.bf16.mxu1 %v3439_v60  ;;  %2160 = vmatprep.mubr.msk.bf16.mxu0 %vm2452_vm1, %v3438_v57 }
 0x52a   :  { %1427 = vmatpush1.bf16.msra.mxu1 %v3103_v61  ;;  %2147 = vmatpush3.bf16.msra.mxu0 %v3109_v11 }
 0x52b   :  { %1428 = vmatprep.subr.bf16.mxu1 %v3115_v12  ;;  %2148 = vmatprep.subr.bf16.mxu0 %v3438_v57 }
 0x52e   :  { %1429 = vmatpush1.bf16.msra.mxu1 %v3122_v21  ;;  %2149 = vmatpush3.bf16.msra.mxu0 %v3128_v50 }
 0x52f   :  { %1430 = vmatprep.subr.bf16.mxu1 %v3134_v4  ;;  %2150 = vmatprep.subr.bf16.mxu0 %v3438_v57 }
 0x532   :  { %1431 = vmatpush1.bf16.msra.mxu1 %v3141_v52  ;;  %2151 = vmatpush3.bf16.msra.mxu0 %v3147_v5 }
 0x533   :  { %1432 = vmatprep.subr.bf16.mxu1 %v3153_v14  ;;  %2152 = vmatprep.subr.bf16.mxu0 %v3438_v57 }
 0x536   :  { %1433 = vmatpush1.bf16.msra.mxu1 %v3160_v25  ;;  %2153 = vmatpush3.bf16.msra.mxu0 %v3166_v15 }
 0x537   :  { %1434 = vmatprep.subr.bf16.mxu1 %v3172_v16  ;;  %2154 = vmatprep.subr.bf16.mxu0 %v3438_v57 }
 0x53a   :  { %1435 = vmatpush1.bf16.msra.mxu1 %v3179_v17  ;;  %2155 = vmatpush3.bf16.msra.mxu0 %v3185_v19 }
 0x53b   :  { %1436 = vmatprep.subr.bf16.mxu1 %v3191_v20  ;;  %2156 = vmatprep.subr.bf16.mxu0 %v3438_v57 }
 0x53e   :  { %1437 = vmatpush1.bf16.msra.mxu1 %v3198_v22  ;;  %2157 = vmatpush3.bf16.msra.mxu0 %v3204_v23 }
 0x53f   :  { %1438 = vmatprep.subr.bf16.mxu1 %v3210_v24  ;;  %2158 = vmatprep.subr.bf16.mxu0 %v3438_v57 }
 0x542   :  { %1439 = vmatpush1.bf16.msra.mxu1 %v3217_v26  ;;  %2159 = vmatpush3.bf16.msra.mxu0 %v3223_v27 }
 0x543   :  { %1560 = vmatprep.subr.bf16.mxu1 %v3068_v13  ;;  %2164 = vmatprep.subr.bf16.mxu0 %v3438_v57  ;;  %v3449_v13 = vld [vmem:[#allocation19_spill] sm:$0xff] }
 0x5e5   :  { %v1322_v55 = vpop.f32.mrf.mxu1  ;;  %v1393_v33 = vpop.f32.mrf.mxu0 }
 0x5e6   :  { %v1331_v39 = vadd.f32 %v1322_v55, %v3446_v58  ;;  %v1394_v35 = vadd.f32 %v2903_v47, %v1393_v33  ;;  %v3451_v55 = vld [vmem:[#allocation7_spill] sm:$0xff] }
 0x5e7   :  { %v1324_v28 = vpop.f32.mrf.mxu1  ;;  %v2142_v53 = vpop.f32.mrf.mxu0 }
 0x5e8   :  { %v1892_v59 = vmul.f32 -1.442695, %v1331_v39  ;;  %v1345_v8 = vadd.f32 %v1324_v28, %v3448_v44 }
 0x5e9   :  { %v1326_v41 = vpop.f32.mrf.mxu1  ;;  %v1396_v62 = vpop.f32.mrf.mxu0 }
 0x5ea   :  { %2364 = vpow2.f32 %v1892_v59  ;;  %v1332_v54 = vadd.f32 %v1326_v41, %v3447_v56  ;;  %v1894_v51 = vmul.f32 -1.442695, %v1345_v8  ;;  %v1397_v7 = vadd.f32 %v2903_v47, %v1396_v62 }
 0x5eb   :  { %v2143_v45 = vpop.f32.mrf.mxu0  ;;  %v1328_v6 = vpop.f32.mrf.mxu1 }
 0x5ec   :  { %v1893_v48 = vmul.f32 -1.442695, %v1332_v54  ;;  %v1346_v2 = vadd.f32 %v1328_v6, %v3449_v13  ;;  %v3336_v6 = vld [vmem:[%s3406_s4] ss:$0 sm:$0xff] }
 0x5ee   :  { %2366 = vpow2.f32 %v1893_v48  ;;  %v1895_v63 = vmul.f32 -1.442695, %v1346_v2 }
 0x5ef   :  { %2368 = vpow2.f32 %v1894_v51 }
 0x5f0   :  { %2370 = vpow2.f32 %v1895_v63 }
 0x5f7   :  { %v2365_v10 = vpop.eup %2364 }
 0x5f8   :  { %v1339_v1 = vadd.f32 1.0, %v2365_v10  ;;  %v3456_v10 = vld [vmem:[#allocation10_spill] sm:$0xff] }
 0x5fa   :  { %2372 = vrcp.f32 %v1339_v1 }
 0x5fb   :  { %v2367_v46 = vpop.eup %2366 }
 0x5fc   :  { %v1340_v29 = vadd.f32 1.0, %v2367_v46  ;;  %v2369_v31 = vpop.eup %2368 }
 0x5fd   :  { %v2371_v32 = vpop.eup %2370  ;;  %v1353_v34 = vadd.f32 1.0, %v2369_v31 }
 0x5fe   :  { %2374 = vrcp.f32 %v1340_v29  ;;  %v1354_v30 = vadd.f32 1.0, %v2371_v32  ;;  %v3457_v32 = vld [vmem:[#allocation12_spill] sm:$0xff] }
 0x5ff   :  { %2376 = vrcp.f32 %v1353_v34 }
 0x600   :  { %2378 = vrcp.f32 %v1354_v30 }
 0x607   :  { %v2373_v36 = vpop.eup %2372 }
 0x608   :  { %v1400_v38 = vmul.f32 %v2373_v36, %v1394_v35 }
 0x60a   :  { %v1402_v0 = vadd.f32 %v1400_v38, %v3450_v40 }
 0x60b   :  { %v2375_v37 = vpop.eup %2374 }
 0x60c   :  { %2380 = vtanh.f32 %v1402_v0  ;;  %v1401_v42 = vmul.f32 %v2375_v37, %v1397_v7  ;;  %v2377_v39 = vpop.eup %2376 }
 0x60d   :  { %v2379_v28 = vpop.eup %2378  ;;  %v1406_v53 = vsub.f32 1.0, %v2377_v39  ;;  %v1410_v41 = vmul.f32 %v2377_v39, %v3237_v18 }
 0x60e   :  { %v1403_v58 = vadd.f32 %v1401_v42, %v3451_v55  ;;  %v1407_v56 = vsub.f32 1.0, %v2379_v28  ;;  %v1411_v47 = vmul.f32 %v2379_v28, %v3240_v43 }
 0x610   :  { %2382 = vtanh.f32 %v1403_v58 }
 0x619   :  { %v2381_v59 = vpop.eup %2380 }
 0x61a   :  { %v1408_v33 = vmul.f32 %v2381_v59, %v1406_v53  ;;  %v2256_v53 = vld [vmem:[%s3407_s5 + $0x38] sm:$0xff]   ;;  %v2257_v59 = vld [vmem:[%s3407_s5 + $0x30] sm:$0xff]  }
 0x61c   :  { %v3288_v54 = vadd.f32 %v1410_v41, %v1408_v33  ;;  %v2258_v33 = vld [vmem:[%s3407_s5 + $0x28] sm:$0xff]   ;;  %v2259_v41 = vld [vmem:[%s3407_s5 + $0x20] sm:$0xff]  }
 0x61d   :  { %v2383_v45 = vpop.eup %2382 }
 0x61e   :  { %v1409_v44 = vmul.f32 %v2383_v45, %v1407_v56  ;;  %v2260_v56 = vld [vmem:[%s3407_s5 + $0x18] sm:$0xff]   ;;  %v2262_v45 = vld [vmem:[%s3407_s5 + $0x8] sm:$0xff]  }
 0x620   :  { %v3291_v62 = vadd.f32 %v1411_v47, %v1409_v44  ;;  %v2263_v44 = vld [vmem:[%s3407_s5] sm:$0xff]  }
 0x622   :  { %v1423_v8 = vpack.c.bf16 %v3291_v62, %v3288_v54 }
 0x624   :  { %1457 = vmatmul.mubr.bf16.vlgmr.msra.gmra.mxu1 %v1423_v8  ;;  %2161 = vmatmul.mubr.bf16.vlgmr.msra.gmra.mxu0 %v1423_v8  ;;  %v3458_v8 = vld [vmem:[#allocation24_spill] sm:$0xff] }
 0x625   :  { %1561 = vmatpush1.bf16.msra.mxu1 %v3025_v9  ;;  %2165 = vmatpush3.bf16.msra.mxu0 %v3031_v49  ;;  %v3452_v49 = vld [vmem:[#allocation20_spill] sm:$0xff] }
 0x626   :  { %1562 = vmatprep.subr.bf16.mxu1 %v3093_v3  ;;  %2166 = vmatprep.subr.bf16.mxu0 %v3438_v57 }
 0x627   :  { %1592 = vmatprep.mubr.bf16.mxu1 %v3439_v60  ;;  %2180 = vmatprep.mubr.msk.bf16.mxu0 %vm2452_vm1, %v3438_v57 }
 0x629   :  { %1563 = vmatpush1.bf16.msra.mxu1 %v3103_v61  ;;  %2167 = vmatpush3.bf16.msra.mxu0 %v3109_v11 }
 0x62a   :  { %1564 = vmatprep.subr.bf16.mxu1 %v3115_v12  ;;  %2168 = vmatprep.subr.bf16.mxu0 %v3438_v57 }
 0x62d   :  { %1565 = vmatpush1.bf16.msra.mxu1 %v3122_v21  ;;  %2169 = vmatpush3.bf16.msra.mxu0 %v3128_v50 }
 0x62e   :  { %1566 = vmatprep.subr.bf16.mxu1 %v3134_v4  ;;  %2170 = vmatprep.subr.bf16.mxu0 %v3438_v57  ;;  %v3453_v4 = vld [vmem:[#allocation22_spill] sm:$0xff] }
 0x631   :  { %1567 = vmatpush1.bf16.msra.mxu1 %v3141_v52  ;;  %2171 = vmatpush3.bf16.msra.mxu0 %v3147_v5 }
 0x632   :  { %1568 = vmatprep.subr.bf16.mxu1 %v3153_v14  ;;  %2172 = vmatprep.subr.bf16.mxu0 %v3438_v57  ;;  %v3454_v14 = vld [vmem:[#allocation21_spill] sm:$0xff] }
 0x635   :  { %1569 = vmatpush1.bf16.msra.mxu1 %v3160_v25  ;;  %2173 = vmatpush3.bf16.msra.mxu0 %v3166_v15 }
 0x636   :  { %1570 = vmatprep.subr.bf16.mxu1 %v3172_v16  ;;  %2174 = vmatprep.subr.bf16.mxu0 %v3438_v57 }
 0x639   :  { %1571 = vmatpush1.bf16.msra.mxu1 %v3179_v17  ;;  %2175 = vmatpush3.bf16.msra.mxu0 %v3185_v19  ;;  %v3455_v17 = vld [vmem:[#allocation23_spill] sm:$0xff] }
 0x63a   :  { %1572 = vmatprep.subr.bf16.mxu1 %v3191_v20  ;;  %2176 = vmatprep.subr.bf16.mxu0 %v3438_v57 }
 0x63d   :  { %1573 = vmatpush1.bf16.msra.mxu1 %v3198_v22  ;;  %2177 = vmatpush3.bf16.msra.mxu0 %v3204_v23 }
 0x63e   :  { %1574 = vmatprep.subr.bf16.mxu1 %v3210_v24  ;;  %2178 = vmatprep.subr.bf16.mxu0 %v3438_v57 }
 0x641   :  { %1575 = vmatpush1.bf16.msra.mxu1 %v3217_v26  ;;  %2179 = vmatpush3.bf16.msra.mxu0 %v3223_v27 }
 0x642   :  { %2184 = vmatprep.subr.bf16.mxu1 %v3438_v57 }
 0x6e4   :  { %v1458_v60 = vpop.f32.mrf.mxu1  ;;  %v1529_v9 = vpop.f32.mrf.mxu0 }
 0x6e5   :  { %v1467_v3 = vadd.f32 %v1458_v60, %v3452_v49  ;;  %v1530_v13 = vadd.f32 %v3336_v6, %v1529_v9 }
 0x6e6   :  { %v1460_v61 = vpop.f32.mrf.mxu1  ;;  %v2162_v11 = vpop.f32.mrf.mxu0 }
 0x6e7   :  { %v1896_v12 = vmul.f32 -1.442695, %v1467_v3  ;;  %v1481_v25 = vadd.f32 %v1460_v61, %v3454_v14 }
 0x6e8   :  { %v1462_v21 = vpop.f32.mrf.mxu1  ;;  %v1532_v50 = vpop.f32.mrf.mxu0 }
 0x6e9   :  { %2384 = vpow2.f32 %v1896_v12  ;;  %v1468_v52 = vadd.f32 %v1462_v21, %v3453_v4  ;;  %v1898_v20 = vmul.f32 -1.442695, %v1481_v25  ;;  %v1533_v46 = vadd.f32 %v3336_v6, %v1532_v50  ;;  %v3459_v12 = vld [vmem:[#allocation26_spill] sm:$0xff]  ;;  %v3460_v4 = vld [vmem:[#allocation25_spill] sm:$0xff] }
 0x6ea   :  { %v2163_v5 = vpop.f32.mrf.mxu0  ;;  %v1464_v16 = vpop.f32.mrf.mxu1 }
 0x6eb   :  { %v1897_v15 = vmul.f32 -1.442695, %v1468_v52  ;;  %v1482_v19 = vadd.f32 %v1464_v16, %v3455_v17 }
 0x6ed   :  { %2386 = vpow2.f32 %v1897_v15  ;;  %v1899_v22 = vmul.f32 -1.442695, %v1482_v19 }
 0x6ee   :  { %2388 = vpow2.f32 %v1898_v20 }
 0x6ef   :  { %2390 = vpow2.f32 %v1899_v22 }
 0x6f6   :  { %v2385_v23 = vpop.eup %2384 }
 0x6f7   :  { %v1475_v24 = vadd.f32 1.0, %v2385_v23 }
 0x6f9   :  { %2392 = vrcp.f32 %v1475_v24 }
 0x6fa   :  { %v2387_v26 = vpop.eup %2386 }
 0x6fb   :  { %v1476_v27 = vadd.f32 1.0, %v2387_v26  ;;  %v2389_v18 = vpop.eup %2388 }
 0x6fc   :  { %v2391_v43 = vpop.eup %2390  ;;  %v1489_v48 = vadd.f32 1.0, %v2389_v18 }
 0x6fd   :  { %2394 = vrcp.f32 %v1476_v27  ;;  %v1490_v51 = vadd.f32 1.0, %v2391_v43 }
 0x6fe   :  { %2396 = vrcp.f32 %v1489_v48 }
 0x6ff   :  { %2398 = vrcp.f32 %v1490_v51 }
 0x706   :  { %v2393_v2 = vpop.eup %2392 }
 0x707   :  { %v1536_v63 = vmul.f32 %v2393_v2, %v1530_v13  ;;  %v3462_v13 = vld [vmem:[#allocation9_spill] sm:$0xff] }
 0x709   :  { %v1538_v1 = vadd.f32 %v1536_v63, %v3456_v10 }
 0x70a   :  { %v2395_v29 = vpop.eup %2394 }
 0x70b   :  { %2400 = vtanh.f32 %v1538_v1  ;;  %v1537_v31 = vmul.f32 %v2395_v29, %v1533_v46  ;;  %v2397_v35 = vpop.eup %2396  ;;  %v3463_v1 = vld [vmem:[#allocation11_spill] sm:$0xff] }
 0x70c   :  { %v2399_v36 = vpop.eup %2398  ;;  %v1542_v30 = vsub.f32 1.0, %v2397_v35  ;;  %v1546_v0 = vmul.f32 %v2397_v35, %v3288_v54  ;;  %v2261_v54 = vld [vmem:[%s3407_s5 + $0x10] sm:$0xff]  }
 0x70d   :  { %v1539_v34 = vadd.f32 %v1537_v31, %v3457_v32  ;;  %v1543_v7 = vsub.f32 1.0, %v2399_v36  ;;  %v1547_v58 = vmul.f32 %v2399_v36, %v3291_v62 }
 0x70f   :  { %2402 = vtanh.f32 %v1539_v34 }
 0x718   :  { %v2401_v38 = vpop.eup %2400 }
 0x719   :  { %v1544_v40 = vmul.f32 %v2401_v38, %v1542_v30 }
 0x71b   :  { %v3343_v37 = vadd.f32 %v1546_v0, %v1544_v40 }
 0x71c   :  { %v2403_v42 = vpop.eup %2402 }
 0x71d   :  { %v1545_v55 = vmul.f32 %v2403_v42, %v1543_v7 }
 0x71f   :  { %v3346_v39 = vadd.f32 %v1547_v58, %v1545_v55  ;;  %v1904_v55 = vld [vmem:[%s3408_s6] ss:$0 sm:$0xff] }
 0x721   :  { %v1559_v28 = vpack.c.bf16 %v3346_v39, %v3343_v37 }
 0x723   :  { %1593 = vmatmul.mubr.bf16.vlgmr.msra.gmra.mxu1 %v1559_v28  ;;  %2181 = vmatmul.mubr.bf16.vlgmr.msra.gmra.mxu0 %v1559_v28 }
 0x724   :  { %2200 = vmatprep.mubr.msk.bf16.mxu1 %vm2452_vm1, %v3438_v57  ;;  %2185 = vmatpush3.bf16.msra.mxu1 %v2256_v53 }
 0x725   :  { %2186 = vmatprep.subr.bf16.mxu1 %v3438_v57 }
 0x728   :  { %2187 = vmatpush3.bf16.msra.mxu1 %v2257_v59 }
 0x729   :  { %2188 = vmatprep.subr.bf16.mxu1 %v3438_v57 }
 0x72c   :  { %2189 = vmatpush3.bf16.msra.mxu1 %v2258_v33 }
 0x72d   :  { %2190 = vmatprep.subr.bf16.mxu1 %v3438_v57 }
 0x730   :  { %2191 = vmatpush3.bf16.msra.mxu1 %v2259_v41 }
 0x731   :  { %2192 = vmatprep.subr.bf16.mxu1 %v3438_v57 }
 0x734   :  { %2193 = vmatpush3.bf16.msra.mxu1 %v2260_v56 }
 0x735   :  { %2194 = vmatprep.subr.bf16.mxu1 %v3438_v57 }
 0x738   :  { %2195 = vmatpush3.bf16.msra.mxu1 %v2261_v54 }
 0x739   :  { %2196 = vmatprep.subr.bf16.mxu1 %v3438_v57 }
 0x73c   :  { %2197 = vmatpush3.bf16.msra.mxu1 %v2262_v45 }
 0x73d   :  { %2198 = vmatprep.subr.bf16.mxu1 %v3438_v57  ;;  %v3461_v57 = vld [vmem:[#allocation27_spill] sm:$0xff] }
 0x740   :  { %2199 = vmatpush3.bf16.msra.mxu1 %v2263_v44 }
 0x7e3   :  { %v1594_v47 = vpop.f32.mrf.mxu1  ;;  %v1665_v62 = vpop.f32.mrf.mxu0 }
 0x7e4   :  { %v1603_v60 = vadd.f32 %v1594_v47, %v3458_v8  ;;  %v1666_v27 = vadd.f32 %v3336_v6, %v1665_v62 }
 0x7e5   :  { %v1596_v9 = vpop.f32.mrf.mxu1  ;;  %v2182_v49 = vpop.f32.mrf.mxu0 }
 0x7e6   :  { %v1900_v3 = vmul.f32 -1.442695, %v1603_v60  ;;  %v1617_v52 = vadd.f32 %v1596_v9, %v3460_v4 }
 0x7e7   :  { %v1598_v61 = vpop.f32.mrf.mxu1  ;;  %v1668_v11 = vpop.f32.mrf.mxu0 }
 0x7e8   :  { %2404 = vpow2.f32 %v1900_v3  ;;  %v1604_v21 = vadd.f32 %v1598_v61, %v3459_v12  ;;  %v1902_v15 = vmul.f32 -1.442695, %v1617_v52  ;;  %v1669_v51 = vadd.f32 %v3336_v6, %v1668_v11 }
 0x7e9   :  { %v2183_v50 = vpop.f32.mrf.mxu0  ;;  %v1600_v14 = vpop.f32.mrf.mxu1 }
 0x7ea   :  { %v1901_v5 = vmul.f32 -1.442695, %v1604_v21  ;;  %v1618_v25 = vadd.f32 %v1600_v14, %v3461_v57 }
 0x7ec   :  { %2406 = vpow2.f32 %v1901_v5  ;;  %v1903_v16 = vmul.f32 -1.442695, %v1618_v25 }
 0x7ed   :  { %2408 = vpow2.f32 %v1902_v15 }
 0x7ee   :  { %2410 = vpow2.f32 %v1903_v16 }
 0x7f5   :  { %v2405_v17 = vpop.eup %2404 }
 0x7f6   :  { %v1611_v19 = vadd.f32 1.0, %v2405_v17 }
 0x7f8   :  { %2412 = vrcp.f32 %v1611_v19 }
 0x7f9   :  { %v2407_v20 = vpop.eup %2406 }
 0x7fa   :  { %v1612_v22 = vadd.f32 1.0, %v2407_v20  ;;  %v2409_v23 = vpop.eup %2408 }
 0x7fb   :  { %v2411_v24 = vpop.eup %2410  ;;  %v1625_v26 = vadd.f32 1.0, %v2409_v23 }
 0x7fc   :  { %2414 = vrcp.f32 %v1612_v22  ;;  %v1626_v43 = vadd.f32 1.0, %v2411_v24 }
 0x7fd   :  { %2416 = vrcp.f32 %v1625_v26 }
 0x7fe   :  { %2418 = vrcp.f32 %v1626_v43 }
 0x805   :  { %v2413_v18 = vpop.eup %2412 }
 0x806   :  { %v1672_v48 = vmul.f32 %v2413_v18, %v1666_v27 }
 0x808   :  { %v1674_v2 = vadd.f32 %v1672_v48, %v3462_v13 }
 0x809   :  { %v2415_v63 = vpop.eup %2414 }
 0x80a   :  { %2420 = vtanh.f32 %v1674_v2  ;;  %v1673_v10 = vmul.f32 %v2415_v63, %v1669_v51  ;;  %v2417_v29 = vpop.eup %2416 }
 0x80b   :  { %v2419_v31 = vpop.eup %2418  ;;  %v1678_v32 = vsub.f32 1.0, %v2417_v29  ;;  %v1682_v36 = vmul.f32 %v2417_v29, %v3343_v37 }
 0x80c   :  { %v1675_v46 = vadd.f32 %v1673_v10, %v3463_v1  ;;  %v1679_v30 = vsub.f32 1.0, %v2419_v31  ;;  %v1683_v6 = vmul.f32 %v2419_v31, %v3346_v39 }
 0x80e   :  { %2422 = vtanh.f32 %v1675_v46 }
 0x817   :  { %v2421_v34 = vpop.eup %2420 }
 0x818   :  { %v1680_v35 = vmul.f32 %v2421_v34, %v1678_v32 }
 0x81a   :  { %v1684_v38 = vadd.f32 %v1682_v36, %v1680_v35 }
 0x81b   :  { %v2423_v40 = vpop.eup %2422 }
 0x81c   :  { %v1681_v0 = vmul.f32 %v2423_v40, %v1679_v30 }
 0x81e   :  { %v1685_v7 = vadd.f32 %v1683_v6, %v1681_v0 }
 0x820   :  { %v1691_v42 = vpack.c.bf16 %v1685_v7, %v1684_v38 }
 0x822   :  { %2201 = vmatmul.mubr.bf16.vlgmr.msra.gmra.mxu1 %v1691_v42 }
 0x8e2   :  { %v1797_v58 = vpop.f32.mrf.mxu1 }
 0x8e3   :  { %v1798_v28 = vadd.f32 %v1904_v55, %v1797_v58 }
 0x8e4   :  { %v2202_v53 = vpop.f32.mrf.mxu1 }
 0x8e5   :  { %1804 = vst [vmem:[%s3409_s7] sm:$0xff] %v1798_v28 }
 0x8e6   :  { %v1800_v37 = vpop.f32.mrf.mxu1 }
 0x8e7   :  { %v1801_v59 = vadd.f32 %v1904_v55, %v1800_v37 }
 0x8e8   :  { %v2203_v33 = vpop.f32.mrf.mxu1 }
 0x8e9   :  { %1805 = vst [vmem:[%s3409_s7 + $0x8] sm:$0xff] %v1801_v59 }

</bundles_post_ra>
